<compile_context>
chip_gen: v7x
topology: tpu7x:2x2x1
jax: 0.10.0
libtpu: 0.0.40
codegen_flags: <defaults>
</compile_context>

<pallas_src>
import jax
import jax.numpy as jnp
from jax.experimental import pallas as pl
from jax.experimental.pallas import tpu as pltpu

HIDDEN = 32


def _round_up(x, m):
    return ((x + m - 1) // m) * m


def _dcrnn_kernel(x_ref, wzh_ref, bzh_ref, wl_ref, bl_ref, out_ref):
    x = x_ref[...]                                    # (TM, Fin)

    # Fused gate matmul: X @ [Weff_z | Weff_h]  ->  (TM, 64)
    gates = jnp.dot(x, wzh_ref[...], preferred_element_type=jnp.float32) + bzh_ref[...]
    z = jax.nn.sigmoid(gates[:, :HIDDEN])             # update gate
    h_tilde = jnp.tanh(gates[:, HIDDEN:])             # candidate state
    h_new = (1.0 - z) * h_tilde                       # H0 == 0 => Z*H0 term vanishes

    act = jnp.maximum(h_new, 0.0)                     # relu
    # Lane-dense head store (output width padded to a multiple of 128 in the wrapper).
    out_ref[...] = (jnp.dot(act, wl_ref[...], preferred_element_type=jnp.float32)
                    + bl_ref[...])


def dcrnn_model_pallas(x, edge_index, edge_weight, params, *, tile_m=512):
    # edge_index / edge_weight are unused by DConv when K == 1 (reference semantics).
    # TODO(synk): K > 1 would require the sparse graph-diffusion term; not implemented here.
    del edge_index, edge_weight
    n, fin = x.shape
    output_len = params["wl"].shape[1]

    # ---- wrapper-side weight folding (exact up to fp32 reassociation) ----
    # H0 == 0 => only the first `fin` rows of each DConv weight contribute, and the two
    # support matrices (W0, W1) collapse into a single effective weight per gate.
    weff_z = params["wz0"][:fin] + params["wz1"][:fin]           # (fin, 32)
    weff_h = params["wh0"][:fin] + params["wh1"][:fin]           # (fin, 32)
    wzh = jnp.concatenate([weff_z, weff_h], axis=1)              # (fin, 64)
    bzh = jnp.concatenate([params["bz"], params["bh"]], axis=1)  # (1, 64)

    # Lane-dense head: pad output width to a multiple of 128.
    out_pad = _round_up(max(output_len, 1), 128)
    wl = jnp.pad(params["wl"], ((0, 0), (0, out_pad - output_len)))  # (32, out_pad)
    bl = jnp.pad(params["bl"], ((0, 0), (0, out_pad - output_len)))  # (1, out_pad)

    # ---- node-dimension tiling ----
    tm = int(min(tile_m, _round_up(n, 8)))
    n_pad = _round_up(n, tm)
    if n_pad != n:
        x = jnp.pad(x, ((0, n_pad - n), (0, 0)))
    grid = (n_pad // tm,)

    out = pl.pallas_call(
        _dcrnn_kernel,
        out_shape=jax.ShapeDtypeStruct((n_pad, out_pad), jnp.float32),
        grid_spec=pltpu.PrefetchScalarGridSpec(
            num_scalar_prefetch=0,
            grid=grid,
            in_specs=[
                pl.BlockSpec((tm, fin), lambda i: (i, 0)),           # x node tile
                pl.BlockSpec((fin, 2 * HIDDEN), lambda i: (0, 0)),   # fused gate weights
                pl.BlockSpec((1, 2 * HIDDEN), lambda i: (0, 0)),     # fused gate bias
                pl.BlockSpec((HIDDEN, out_pad), lambda i: (0, 0)),   # head weight (padded)
                pl.BlockSpec((1, out_pad), lambda i: (0, 0)),        # head bias (padded)
            ],
            out_specs=pl.BlockSpec((tm, out_pad), lambda i: (i, 0)),
        ),
        compiler_params=pltpu.CompilerParams(
            dimension_semantics=("parallel",)),
    )(x, wzh, bzh, wl, bl)

    return out[:n, :output_len]


def dcrnn_model_ref(x, params):
    # Pure-JAX reference mirroring the torch code (full concat form, including the R gate
    # and the zero initial hidden state) to validate the algebraic simplifications.
    n = x.shape[0]
    h = jnp.zeros((n, HIDDEN), dtype=jnp.float32)

    def dconv(y, w0, w1, b):
        return y @ w0 + y @ w1 + b

    xh = jnp.concatenate([x, h], axis=1)
    z = jax.nn.sigmoid(dconv(xh, params["wz0"], params["wz1"], params["bz"]))
    r = jax.nn.sigmoid(dconv(xh, params["wr0"], params["wr1"], params["br"]))
    xhr = jnp.concatenate([x, h * r], axis=1)
    h_tilde = jnp.tanh(dconv(xhr, params["wh0"], params["wh1"], params["bh"]))
    h_new = z * h + (1.0 - z) * h_tilde
    act = jnp.maximum(h_new, 0.0)
    return act @ params["wl"] + params["bl"]


def init_params(key, node_features, output_len):
    cin = node_features + HIDDEN
    keys = jax.random.split(key, 10)
    scale = 0.1

    def w(k, shape):
        return (scale * jax.random.normal(k, shape)).astype(jnp.float32)

    return {
        # DConv weights: original parameter shape is (2, K=1, cin, 32); split into W0, W1.
        "wz0": w(keys[0], (cin, HIDDEN)), "wz1": w(keys[1], (cin, HIDDEN)),
        "bz": jnp.zeros((1, HIDDEN), jnp.float32),
        "wr0": w(keys[2], (cin, HIDDEN)), "wr1": w(keys[3], (cin, HIDDEN)),
        "br": jnp.zeros((1, HIDDEN), jnp.float32),
        "wh0": w(keys[4], (cin, HIDDEN)), "wh1": w(keys[5], (cin, HIDDEN)),
        "bh": jnp.zeros((1, HIDDEN), jnp.float32),
        # Linear(32 -> output_len)
        "wl": w(keys[6], (HIDDEN, output_len)),
        "bl": w(keys[7], (1, output_len)),
    }


if __name__ == "__main__":
    node_features = 8
    output_len = 8
    num_nodes = 1024          # with tile_m=512 this gives a 2-tile parallel grid
    num_edges = 24

    key = jax.random.PRNGKey(0)
    kx, ke, kw, kp = jax.random.split(key, 4)

    x = jax.random.normal(kx, (num_nodes, node_features), dtype=jnp.float32)
    edge_index = jax.random.randint(ke, (2, num_edges), 0, num_nodes)   # unused for K=1
    edge_weight = jax.random.uniform(kw, (num_edges,), dtype=jnp.float32)

    params = init_params(kp, node_features, output_len)

    out = dcrnn_model_pallas(x, edge_index, edge_weight, params)
    out = jax.block_until_ready(out)

    ref = dcrnn_model_ref(x, params)
    assert out.shape == (num_nodes, output_len)
    assert jnp.allclose(out, ref, atol=1e-5, rtol=1e-5), "Pallas result mismatch vs JAX reference"

    print("KERNEL_OK")
</pallas_src>

<mosaic_0001>
module attributes {stable_mosaic.version = 11 : i64} {
  func.func @_dcrnn_kernel(%arg0: i32, %arg1: memref<512x8xf32, #tpu.memory_space<vmem>>, %arg2: memref<8x64xf32, #tpu.memory_space<vmem>>, %arg3: memref<1x64xf32, #tpu.memory_space<vmem>>, %arg4: memref<32x128xf32, #tpu.memory_space<vmem>>, %arg5: memref<1x128xf32, #tpu.memory_space<vmem>>, %arg6: memref<512x128xf32, #tpu.memory_space<vmem>>) attributes {dimension_semantics = [#tpu.dimension_semantics<parallel>], iteration_bounds = array<i64: 2>, scalar_prefetch = 0 : i64, scratch_operands = 0 : i64, tpu.core_type = #tpu.core_type<tc>, window_params = [{transform_indices = @transform_0, window_bounds = array<i64: 512, 8>}, {pipeline_mode = #tpu.pipeline_mode<synchronous>, transform_indices = @transform_1, window_bounds = array<i64: 8, 64>}, {pipeline_mode = #tpu.pipeline_mode<synchronous>, transform_indices = @transform_2, window_bounds = array<i64: 1, 64>}, {pipeline_mode = #tpu.pipeline_mode<synchronous>, transform_indices = @transform_3, window_bounds = array<i64: 32, 128>}, {pipeline_mode = #tpu.pipeline_mode<synchronous>, transform_indices = @transform_4, window_bounds = array<i64: 1, 128>}, {transform_indices = @transform_5, window_bounds = array<i64: 512, 128>}]} {
    %c0 = arith.constant 0 : index
    %c0_0 = arith.constant 0 : index
    %0 = vector.load %arg1[%c0, %c0_0] : memref<512x8xf32, #tpu.memory_space<vmem>>, vector<512x8xf32>
    %c0_1 = arith.constant 0 : index
    %c0_2 = arith.constant 0 : index
    %1 = vector.load %arg2[%c0_1, %c0_2] : memref<8x64xf32, #tpu.memory_space<vmem>>, vector<8x64xf32>
    %cst = arith.constant dense<0.000000e+00> : vector<512x64xf32>
    %2 = tpu.matmul %0, %1, %cst {dimension_numbers = #tpu.dot_dimension_numbers<[1], [0], [0], [1], [0, 0, 1, 1], [], []>} : vector<512x8xf32>, vector<8x64xf32>, vector<512x64xf32> -> vector<512x64xf32>
    %c0_3 = arith.constant 0 : index
    %c0_4 = arith.constant 0 : index
    %3 = vector.load %arg3[%c0_3, %c0_4] : memref<1x64xf32, #tpu.memory_space<vmem>>, vector<1x64xf32>
    %4 = vector.broadcast %3 : vector<1x64xf32> to vector<512x64xf32>
    %5 = arith.addf %2, %4 : vector<512x64xf32>
    %6 = vector.extract_strided_slice %5 {offsets = [0, 0], sizes = [512, 32], strides = [1, 1]} : vector<512x64xf32> to vector<512x32xf32>
    %7 = arith.negf %6 : vector<512x32xf32>
    %8 = math.exp %7 : vector<512x32xf32>
    %cst_5 = arith.constant 1.000000e+00 : f32
    %9 = vector.broadcast %cst_5 : f32 to vector<512x32xf32>
    %10 = arith.addf %9, %8 : vector<512x32xf32>
    %11 = arith.divf %9, %10 : vector<512x32xf32>
    %12 = vector.extract_strided_slice %5 {offsets = [0, 32], sizes = [512, 32], strides = [1, 1]} : vector<512x64xf32> to vector<512x32xf32>
    %13 = math.tanh %12 : vector<512x32xf32>
    %cst_6 = arith.constant 1.000000e+00 : f32
    %14 = vector.broadcast %cst_6 : f32 to vector<512x32xf32>
    %15 = arith.subf %14, %11 : vector<512x32xf32>
    %16 = arith.mulf %15, %13 : vector<512x32xf32>
    %cst_7 = arith.constant 0.000000e+00 : f32
    %17 = vector.broadcast %cst_7 : f32 to vector<512x32xf32>
    %18 = arith.maximumf %16, %17 : vector<512x32xf32>
    %c0_8 = arith.constant 0 : index
    %c0_9 = arith.constant 0 : index
    %19 = vector.load %arg4[%c0_8, %c0_9] : memref<32x128xf32, #tpu.memory_space<vmem>>, vector<32x128xf32>
    %cst_10 = arith.constant dense<0.000000e+00> : vector<512x128xf32>
    %20 = tpu.matmul %18, %19, %cst_10 {dimension_numbers = #tpu.dot_dimension_numbers<[1], [0], [0], [1], [0, 0, 1, 1], [], []>} : vector<512x32xf32>, vector<32x128xf32>, vector<512x128xf32> -> vector<512x128xf32>
    %c0_11 = arith.constant 0 : index
    %c0_12 = arith.constant 0 : index
    %21 = vector.load %arg5[%c0_11, %c0_12] : memref<1x128xf32, #tpu.memory_space<vmem>>, vector<1x128xf32>
    %22 = vector.broadcast %21 : vector<1x128xf32> to vector<512x128xf32>
    %23 = arith.addf %20, %22 : vector<512x128xf32>
    %c0_13 = arith.constant 0 : index
    %c0_14 = arith.constant 0 : index
    %24 = vector.load %arg6[%c0_13, %c0_14] : memref<512x128xf32, #tpu.memory_space<vmem>>, vector<512x128xf32>
    tpu.vector_store %arg6[%c0_13, %c0_14], %23 {strides = array<i32>} : memref<512x128xf32, #tpu.memory_space<vmem>>, vector<512x128xf32>,
    return
  }
  func.func @transform_0(%arg0: i32) -> (i32, i32) {
    %c0_i32 = arith.constant 0 : i32
    %c0_i32_0 = arith.constant 0 : i32
    return %arg0, %c0_i32 : i32, i32
  }
  func.func @transform_1(%arg0: i32) -> (i32, i32) {
    %c0_i32 = arith.constant 0 : i32
    %c0_i32_0 = arith.constant 0 : i32
    %c0_i32_1 = arith.constant 0 : i32
    return %c0_i32, %c0_i32_0 : i32, i32
  }
  func.func @transform_2(%arg0: i32) -> (i32, i32) {
    %c0_i32 = arith.constant 0 : i32
    %c0_i32_0 = arith.constant 0 : i32
    %c0_i32_1 = arith.constant 0 : i32
    return %c0_i32, %c0_i32_0 : i32, i32
  }
  func.func @transform_3(%arg0: i32) -> (i32, i32) {
    %c0_i32 = arith.constant 0 : i32
    %c0_i32_0 = arith.constant 0 : i32
    %c0_i32_1 = arith.constant 0 : i32
    return %c0_i32, %c0_i32_0 : i32, i32
  }
  func.func @transform_4(%arg0: i32) -> (i32, i32) {
    %c0_i32 = arith.constant 0 : i32
    %c0_i32_0 = arith.constant 0 : i32
    %c0_i32_1 = arith.constant 0 : i32
    return %c0_i32, %c0_i32_0 : i32, i32
  }
  func.func @transform_5(%arg0: i32) -> (i32, i32) {
    %c0_i32 = arith.constant 0 : i32
    %c0_i32_0 = arith.constant 0 : i32
    return %arg0, %c0_i32 : i32, i32
  }
}

</mosaic_0001>

<bundles_post_ra>
// kernel: tpu_custom_call.1
= control target key start
LH: loop header
LB: loop body
LE: loop exit
PB: predicated region body
PF: predicated region fallthrough
CT: control target
= control target key end

     0   :  { %10 = vsyncpa [#allocation3], 0  ;;  %s4445_s0 = inlined_call_operand.vmem [shape: f32[1024,8], index: 0, kind: input, shape index: {}]   ;;  %s4446_s1 = inlined_call_operand.vmem [shape: f32[8,64], index: 1, kind: input, shape index: {}]   ;;  %s4447_s2 = inlined_call_operand.vmem [shape: f32[1,64], index: 2, kind: input, shape index: {}]   ;;  %s4448_s3 = inlined_call_operand.vmem [shape: f32[32,128], index: 3, kind: input, shape index: {}]   ;;  %s4449_s4 = inlined_call_operand.vmem [shape: f32[1,128], index: 4, kind: input, shape index: {}]   ;;  %s4450_s5 = inlined_call_operand.hbm [shape: f32[1024,128], index: 5, kind: output, shape index: {}]  }
   0x1   :  { %12 = vsyncpa [#allocation3 + $0x1], 0  ;;  %s3575_s18 = smov 0   ;;  %s3577_s19 = smov 0  }
   0x2   :  { %s3579_s20 = smov 0   ;;  %s3581_s21 = smov 0  }
   0x3 LB: > { %s3596_s22 = sadd.s32 4294967295, %s3539_s21   ;;  %s2501_s23 = sadd.s32 4294967294, %s3539_s21   ;;  %s3539_s21 = sphi %s3581_s21, %s4498_s21   ;;  %s3535_s20 = sphi %s3579_s20, %s4497_s20   ;;  %s3531_s19 = sphi %s3577_s19, %s4496_s19   ;;  %s3527_s18 = sphi %s3575_s18, %s4495_s18  }
   0x4   : > { %s3600_s24 = sadd.s32 1, %s3539_s21   ;;  %s135_s25 = sadd.s32 1, %s3535_s20 }
   0x5   : > { %s132_s26 = ssub.s32 %s3539_s21, %s3600_s24  ;;  %p145_p0 = scmp.ne.s32.totalorder %s3535_s20, %s3531_s19 }
   0x6   : > { %p133_p1 = scmp.eq.s32.totalorder %s132_s26, 0  ;;  %p146_p2 = scmp.eq.s32.totalorder %s3596_s22, 1 }
   0x7   : > { %p151_p3 = scmp.ne.s32.totalorder %s3531_s19, %s3527_s18  ;;  %p152_p4 = scmp.eq.s32.totalorder %s2501_s23, 1 }
   0x8   : > { %s3611_s27 = scalar_select %p133_p1, %s3535_s20, %s135_s25  }
   0x9   : > { %p3613_p5 = por %p146_p2, %p145_p0  ;;  %p3617_p6 = por %p152_p4, %p151_p3 }
   0xa   : > { %p2504_p7 = scmp.ge.s32.totalorder %s3539_s21, 1  ;;  %p191_p8 = scmp.lt.s32.totalorder %s3539_s21, 3 }
   0xc   : > { %p192_p9 = pnand %p2504_p7, %p191_p8 }
   0xe   : > { %195 = sbr.rel (%p192_p9) target bundleno = 744 (0x2e8), region = 40 }
  0x15   : > { %v290_v0 = vld [vmem:[%s4446_s1] sm:$0xff]  ;;  %s2506_s7 = sshll.u32 %s3596_s22, 6  ;;  %vm298_vm0 = vcmask 64512   ;;  %s3541_s14 = smov 96   ;;  %vm1783_vm1 = vcmask 261120  }
  0x16   : > { %2841 = vmatprep.subr.mxu0 %v290_v0  ;;  %p220_p10 = scmp.lt.s32.totalorder %s2506_s7, 127  ;;  %s2707_s12 = sshll.u32 %s3596_s22, 13 }
  0x17   : > { %2842 = vmatpush3.msra.mxu0 %v290_v0  ;;  %s4395_s16 = scalar_lea.hbm %s4450_s5, %s2707_s12  ;;  %s3542_s23 = smov [#allocation2]  }
  0x18   : > { %s4500_s7 = smov (!%p220_p10, %s2506_s7), 127  ;;  %s3481_s25 = sshll.u32 %s3542_s23, 4  ;;  %s3482_s25 = int_to_ptr.vmem [resolvable:$false] %s3481_s25 }
  0x19   : > { %s2507_s8 = sshll.u32 %s4500_s7, 3  ;;  %s216_s7 = sand.u32 1, %s3531_s19  }
  0x1a   : > { %s3630_s11 = scalar_lea.vmem %s4445_s0, %s2507_s8  ;;  %s2505_s8 = sshll.u32 %s216_s7, 9 }
  0x1b   : > { %v226_v1 = vld [vmem:[%s3630_s11] sm:$0xff]  ;;  %v227_v2 = vld [vmem:[%s3630_s11 + $0x8] sm:$0xff]  ;;  %v228_v3 = vld [vmem:[%s3630_s11 + $0x10] sm:$0xff]  ;;  %s4404_s22 = scalar_lea.sflag [#allocation3], %s216_s7  ;;  %s3483_s26 = scalar_lea.vmem %s3482_s25, 16384 }
  0x1c   : > { %2843 = vmatprep.mubr.msk.f32.mxu0 %vm298_vm0, %v226_v1  ;;  %v229_v4 = vld [vmem:[%s3630_s11 + $0x18] sm:$0xff]  ;;  %v230_v5 = vld [vmem:[%s3630_s11 + $0x20] sm:$0xff]  ;;  %v231_v6 = vld [vmem:[%s3630_s11 + $0x28] sm:$0xff] }
  0x1d   : > { %2844 = vmatmul.mubr.msk.f32.vlgmr.msra.gmra.mrb[0].mxu0 %vm298_vm0, %v227_v2  ;;  %v232_v7 = vld [vmem:[%s3630_s11 + $0x30] sm:$0xff]  ;;  %v233_v8 = vld [vmem:[%s3630_s11 + $0x38] sm:$0xff]  ;;  %v234_v9 = vld [vmem:[%s3630_s11 + $0x40] sm:$0xff] }
  0x1e   : > { %2846 = vmatprep.mubr.msk.f32.mxu0 %vm298_vm0, %v228_v3  ;;  %v235_v10 = vld [vmem:[%s3630_s11 + $0x48] sm:$0xff]  ;;  %v236_v11 = vld [vmem:[%s3630_s11 + $0x50] sm:$0xff]  ;;  %v237_v12 = vld [vmem:[%s3630_s11 + $0x58] sm:$0xff] }
  0x1f   : > { %v238_v13 = vld [vmem:[%s3630_s11 + $0x60] sm:$0xff]  ;;  %v239_v14 = vld [vmem:[%s3630_s11 + $0x68] sm:$0xff]  ;;  %v240_v15 = vld [vmem:[%s3630_s11 + $0x70] sm:$0xff] }
  0x20   : > { %v241_v16 = vld [vmem:[%s3630_s11 + $0x78] sm:$0xff]  ;;  %v242_v17 = vld [vmem:[%s3630_s11 + $0x80] sm:$0xff]  ;;  %v243_v18 = vld [vmem:[%s3630_s11 + $0x88] sm:$0xff] }
  0x21   : > { %2847 = vmatmul.mubr.msk.f32.gmra.mrb[2].mxu0 %vm298_vm0, %v229_v4  ;;  %v244_v19 = vld [vmem:[%s3630_s11 + $0x90] sm:$0xff]  ;;  %v245_v20 = vld [vmem:[%s3630_s11 + $0x98] sm:$0xff]  ;;  %v246_v21 = vld [vmem:[%s3630_s11 + $0xa0] sm:$0xff] }
  0x22   : > { %2849 = vmatprep.mubr.msk.f32.mxu0 %vm298_vm0, %v230_v5  ;;  %v247_v22 = vld [vmem:[%s3630_s11 + $0xa8] sm:$0xff]  ;;  %v248_v23 = vld [vmem:[%s3630_s11 + $0xb0] sm:$0xff]  ;;  %v249_v24 = vld [vmem:[%s3630_s11 + $0xb8] sm:$0xff] }
  0x23   : > { %v250_v25 = vld [vmem:[%s3630_s11 + $0xc0] sm:$0xff]  ;;  %v251_v26 = vld [vmem:[%s3630_s11 + $0xc8] sm:$0xff]  ;;  %v252_v27 = vld [vmem:[%s3630_s11 + $0xd0] sm:$0xff] }
  0x24   : > { %v253_v28 = vld [vmem:[%s3630_s11 + $0xd8] sm:$0xff]  ;;  %v254_v29 = vld [vmem:[%s3630_s11 + $0xe0] sm:$0xff]  ;;  %v255_v30 = vld [vmem:[%s3630_s11 + $0xe8] sm:$0xff] }
  0x25   : > { %2850 = vmatmul.mubr.msk.f32.gmra.mrb[4].mxu0 %vm298_vm0, %v231_v6  ;;  %v256_v31 = vld [vmem:[%s3630_s11 + $0xf0] sm:$0xff]  ;;  %v257_v32 = vld [vmem:[%s3630_s11 + $0xf8] sm:$0xff]  ;;  %v258_v33 = vld [vmem:[%s3630_s11 + $0x100] sm:$0xff] }
  0x26   : > { %2852 = vmatprep.mubr.msk.f32.mxu0 %vm298_vm0, %v232_v7  ;;  %v259_v34 = vld [vmem:[%s3630_s11 + $0x108] sm:$0xff]  ;;  %v260_v35 = vld [vmem:[%s3630_s11 + $0x110] sm:$0xff]  ;;  %v261_v36 = vld [vmem:[%s3630_s11 + $0x118] sm:$0xff] }
  0x27   : > { %v262_v37 = vld [vmem:[%s3630_s11 + $0x120] sm:$0xff]  ;;  %v263_v38 = vld [vmem:[%s3630_s11 + $0x128] sm:$0xff]  ;;  %v264_v39 = vld [vmem:[%s3630_s11 + $0x130] sm:$0xff] }
  0x28   : > { %v265_v40 = vld [vmem:[%s3630_s11 + $0x138] sm:$0xff]  ;;  %v266_v41 = vld [vmem:[%s3630_s11 + $0x140] sm:$0xff]  ;;  %v267_v42 = vld [vmem:[%s3630_s11 + $0x148] sm:$0xff] }
  0x29   : > { %2853 = vmatmul.mubr.msk.f32.gmra.mrb[6].mxu0 %vm298_vm0, %v233_v8  ;;  %v268_v43 = vld [vmem:[%s3630_s11 + $0x150] sm:$0xff]  ;;  %v269_v44 = vld [vmem:[%s3630_s11 + $0x158] sm:$0xff]  ;;  %v270_v45 = vld [vmem:[%s3630_s11 + $0x160] sm:$0xff] }
  0x2a   : > { %2855 = vmatprep.mubr.msk.f32.mxu0 %vm298_vm0, %v234_v9  ;;  %v271_v46 = vld [vmem:[%s3630_s11 + $0x168] sm:$0xff]  ;;  %v272_v47 = vld [vmem:[%s3630_s11 + $0x170] sm:$0xff]  ;;  %v273_v48 = vld [vmem:[%s3630_s11 + $0x178] sm:$0xff] }
  0x2b   : > { %v274_v49 = vld [vmem:[%s3630_s11 + $0x180] sm:$0xff]  ;;  %v275_v50 = vld [vmem:[%s3630_s11 + $0x188] sm:$0xff]  ;;  %v276_v51 = vld [vmem:[%s3630_s11 + $0x190] sm:$0xff] }
  0x2c   : > { %v277_v52 = vld [vmem:[%s3630_s11 + $0x198] sm:$0xff]  ;;  %v278_v53 = vld [vmem:[%s3630_s11 + $0x1a0] sm:$0xff]  ;;  %v279_v54 = vld [vmem:[%s3630_s11 + $0x1a8] sm:$0xff] }
  0x2d   : > { %2856 = vmatmul.mubr.msk.f32.gmra.mrb[8].mxu0 %vm298_vm0, %v235_v10  ;;  %v280_v55 = vld [vmem:[%s3630_s11 + $0x1b0] sm:$0xff]  ;;  %v281_v56 = vld [vmem:[%s3630_s11 + $0x1b8] sm:$0xff]  ;;  %v282_v57 = vld [vmem:[%s3630_s11 + $0x1c0] sm:$0xff] }
  0x2e   : > { %2858 = vmatprep.mubr.msk.f32.mxu0 %vm298_vm0, %v236_v11  ;;  %v283_v58 = vld [vmem:[%s3630_s11 + $0x1c8] sm:$0xff]  ;;  %v284_v59 = vld [vmem:[%s3630_s11 + $0x1d0] sm:$0xff]  ;;  %v285_v60 = vld [vmem:[%s3630_s11 + $0x1d8] sm:$0xff] }
  0x2f   : > { %v286_v61 = vld [vmem:[%s3630_s11 + $0x1e0] sm:$0xff]  ;;  %v287_v62 = vld [vmem:[%s3630_s11 + $0x1e8] sm:$0xff]  ;;  %v288_v63 = vld [vmem:[%s3630_s11 + $0x1f0] sm:$0xff] }
  0x30   : > { %v289_v0 = vld [vmem:[%s3630_s11 + $0x1f8] sm:$0xff]  ;;  %v3763_v1 = vld [vmem:[%s4447_s2] ss:$0 sm:$0xff]  ;;  %s4265_s11 = scalar_lea.vmem [#allocation2], %s2505_s8 }
  0x31   : > { %2859 = vmatmul.mubr.msk.f32.gmra.mrb[10].mxu0 %vm298_vm0, %v237_v12  ;;  %s2439_s13 = sshll.u32 %s4265_s11, 4  ;;  %s4397_s13 = int_to_ptr.vmem [resolvable:$true] %s2439_s13 }
  0x32   : > { %2861 = vmatprep.mubr.msk.f32.mxu0 %vm298_vm0, %v238_v13  ;;  %s3477_s17 = scalar_lea.vmem %s4397_s13, 8192  ;;  %p3484_p0 = scmp.lt.s32.totalorder %s4397_s13, %s3482_s25 }
  0x33   : > { %p3478_p11 = scmp.ne.s32.totalorder %s4397_s13, %s3477_s17  ;;  %p3485_p1 = scmp.lt.s32.totalorder %s3483_s26, %s3477_s17 }
  0x35   : > { %2862 = vmatmul.mubr.msk.f32.gmra.mrb[12].mxu0 %vm298_vm0, %v239_v14  ;;  %p3479_p12 = pnand %p3478_p11, %p3613_p5  ;;  %p3486_p2 = por %p3485_p1, %p3484_p0 }
  0x36   : > { %2864 = vmatprep.mubr.msk.f32.mxu0 %vm298_vm0, %v240_v15 }
  0x37   : > { %p3480_p13 = pneg %p3479_p12 }
  0x39   : > { %2865 = vmatmul.mubr.msk.f32.gmra.mrb[14].mxu0 %vm298_vm0, %v241_v16  ;;  %p3487_p3 = pnand %p3486_p2, %p3480_p13 }
  0x3a   : > { %2867 = vmatprep.mubr.msk.f32.mxu0 %vm298_vm0, %v242_v17 }
  0x3d   : > { %2868 = vmatmul.mubr.msk.f32.gmra.mrb[16].mxu0 %vm298_vm0, %v243_v18 }
  0x3e   : > { %2870 = vmatprep.mubr.msk.f32.mxu0 %vm298_vm0, %v244_v19 }
  0x41   : > { %2871 = vmatmul.mubr.msk.f32.gmra.mrb[18].mxu0 %vm298_vm0, %v245_v20 }
  0x42   : > { %2873 = vmatprep.mubr.msk.f32.mxu0 %vm298_vm0, %v246_v21 }
  0x45   : > { %2874 = vmatmul.mubr.msk.f32.gmra.mrb[20].mxu0 %vm298_vm0, %v247_v22 }
  0x46   : > { %2876 = vmatprep.mubr.msk.f32.mxu0 %vm298_vm0, %v248_v23 }
  0x49   : > { %2877 = vmatmul.mubr.msk.f32.gmra.mrb[22].mxu0 %vm298_vm0, %v249_v24  ;;  %v1772_v24 = vld [vmem:[%s4448_s3] sm:$0xff] }
  0x4a   : > { %2879 = vmatprep.mubr.msk.f32.mxu0 %vm298_vm0, %v250_v25  ;;  %v1773_v25 = vld [vmem:[%s4448_s3 + $0x8] sm:$0xff] }
  0x4d   : > { %2880 = vmatmul.mubr.msk.f32.gmra.mrb[24].mxu0 %vm298_vm0, %v251_v26 }
  0x4e   : > { %2882 = vmatprep.mubr.msk.f32.mxu0 %vm298_vm0, %v252_v27  ;;  %v3043_v27 = vpack.c.bf16 %v1773_v25, %v1772_v24 }
  0x50   : > { %3044 = vmatprep.subr.bf16.mxu1 %v3043_v27 }
  0x51   : > { %2883 = vmatmul.mubr.msk.f32.gmra.mrb[26].mxu0 %vm298_vm0, %v253_v28  ;;  %3046 = vmatpush3.bf16.msra.mxu1 %v3043_v27 }
  0x52   : > { %2885 = vmatprep.mubr.msk.f32.mxu0 %vm298_vm0, %v254_v29  ;;  %v1774_v29 = vld [vmem:[%s4448_s3 + $0x10] sm:$0xff] }
  0x55   : > { %2886 = vmatmul.mubr.msk.f32.gmra.mrb[28].mxu0 %vm298_vm0, %v255_v30  ;;  %v1775_v30 = vld [vmem:[%s4448_s3 + $0x18] sm:$0xff] }
  0x56   : > { %2888 = vmatprep.mubr.msk.f32.mxu0 %vm298_vm0, %v256_v31 }
  0x59   : > { %2889 = vmatmul.mubr.msk.f32.gmra.mrb[30].mxu0 %vm298_vm0, %v257_v32 }
  0x5a   : > { %2891 = vmatprep.mubr.msk.f32.mxu0 %vm298_vm0, %v258_v33  ;;  %v3047_v33 = vpack.c.bf16 %v1775_v30, %v1774_v29 }
  0x5c   : > { %3048 = vmatprep.subr.bf16.mxu1 %v3047_v33 }
  0x5d   : > { %2892 = vmatmul.mubr.msk.f32.gmra.mrb[32].mxu0 %vm298_vm0, %v259_v34  ;;  %3050 = vmatpush3.bf16.msra.mxu1 %v3047_v33 }
  0x5e   : > { %2894 = vmatprep.mubr.msk.f32.mxu0 %vm298_vm0, %v260_v35 }
  0x61   : > { %2895 = vmatmul.mubr.msk.f32.gmra.mrb[34].mxu0 %vm298_vm0, %v261_v36 }
  0x62   : > { %2897 = vmatprep.mubr.msk.f32.mxu0 %vm298_vm0, %v262_v37 }
  0x65   : > { %2898 = vmatmul.mubr.msk.f32.gmra.mrb[36].mxu0 %vm298_vm0, %v263_v38 }
  0x66   : > { %2900 = vmatprep.mubr.msk.f32.mxu0 %vm298_vm0, %v264_v39 }
  0x69   : > { %2901 = vmatmul.mubr.msk.f32.gmra.mrb[38].mxu0 %vm298_vm0, %v265_v40 }
  0x6a   : > { %2903 = vmatprep.mubr.msk.f32.mxu0 %vm298_vm0, %v266_v41 }
  0x6d   : > { %2904 = vmatmul.mubr.msk.f32.gmra.mrb[40].mxu0 %vm298_vm0, %v267_v42 }
  0x6e   : > { %2906 = vmatprep.mubr.msk.f32.mxu0 %vm298_vm0, %v268_v43 }
  0x71   : > { %2907 = vmatmul.mubr.msk.f32.gmra.mrb[42].mxu0 %vm298_vm0, %v269_v44 }
  0x72   : > { %2909 = vmatprep.mubr.msk.f32.mxu0 %vm298_vm0, %v270_v45 }
  0x75   : > { %2910 = vmatmul.mubr.msk.f32.gmra.mrb[44].mxu0 %vm298_vm0, %v271_v46 }
  0x76   : > { %2912 = vmatprep.mubr.msk.f32.mxu0 %vm298_vm0, %v272_v47 }
  0x79   : > { %2913 = vmatmul.mubr.msk.f32.gmra.mrb[46].mxu0 %vm298_vm0, %v273_v48 }
  0x7a   : > { %2915 = vmatprep.mubr.msk.f32.mxu0 %vm298_vm0, %v274_v49 }
  0x7d   : > { %2916 = vmatmul.mubr.msk.f32.gmra.mrb[48].mxu0 %vm298_vm0, %v275_v50 }
  0x7e   : > { %2918 = vmatprep.mubr.msk.f32.mxu0 %vm298_vm0, %v276_v51 }
  0x81   : > { %2919 = vmatmul.mubr.msk.f32.gmra.mrb[50].mxu0 %vm298_vm0, %v277_v52 }
  0x82   : > { %2921 = vmatprep.mubr.msk.f32.mxu0 %vm298_vm0, %v278_v53 }
  0x85   : > { %2922 = vmatmul.mubr.msk.f32.gmra.mrb[52].mxu0 %vm298_vm0, %v279_v54 }
  0x86   : > { %2924 = vmatprep.mubr.msk.f32.mxu0 %vm298_vm0, %v280_v55 }
  0x89   : > { %2925 = vmatmul.mubr.msk.f32.gmra.mrb[54].mxu0 %vm298_vm0, %v281_v56 }
  0x8a   : > { %2927 = vmatprep.mubr.msk.f32.mxu0 %vm298_vm0, %v282_v57 }
  0x8d   : > { %2928 = vmatmul.mubr.msk.f32.gmra.mrb[56].mxu0 %vm298_vm0, %v283_v58 }
  0x8e   : > { %2930 = vmatprep.mubr.msk.f32.mxu0 %vm298_vm0, %v284_v59 }
  0x91   : > { %2931 = vmatmul.mubr.msk.f32.gmra.mrb[58].mxu0 %vm298_vm0, %v285_v60 }
  0x92   : > { %2933 = vmatprep.mubr.msk.f32.mxu0 %vm298_vm0, %v286_v61 }
  0x95   : > { %2934 = vmatmul.mubr.msk.f32.gmra.mrb[60].mxu0 %vm298_vm0, %v287_v62 }
  0x96   : > { %2936 = vmatprep.mubr.msk.f32.mxu0 %vm298_vm0, %v288_v63 }
  0x99   : > { %2937 = vmatmul.mubr.msk.f32.gmra.mrb[62].mxu0 %vm298_vm0, %v289_v0 }
  0xf0   : > { %v2845_v2 = vpop.f32.mrb[0].mxu0 }
  0xf1   : > { %v557_v3 = vpop.f32.mrb[1].mxu0  ;;  %v3769_v5 = vadd.f32 %v2845_v2, %v3763_v1 }
  0xf2   : > { %v3766_v4 = vadd.f32 %v3763_v1, %v557_v3 }
  0xf4   : > { %3093 = vtanh.f32 %v3766_v4  ;;  %v2848_v6 = vpop.f32.mrb[2].mxu0 }
  0xf5   : > { %v567_v7 = vpop.f32.mrb[3].mxu0  ;;  %3095 = vtanh.f32 %v3769_v5  ;;  %v3777_v9 = vadd.f32 %v2848_v6, %v3763_v1 }
  0xf6   : > { %v3773_v8 = vadd.f32 %v3763_v1, %v567_v7 }
  0xf8   : > { %3097 = vtanh.f32 %v3773_v8  ;;  %v2851_v10 = vpop.f32.mrb[4].mxu0 }
  0xf9   : > { %v577_v11 = vpop.f32.mrb[5].mxu0  ;;  %3099 = vtanh.f32 %v3777_v9  ;;  %v3785_v13 = vadd.f32 %v2851_v10, %v3763_v1 }
  0xfa   : > { %v3781_v12 = vadd.f32 %v3763_v1, %v577_v11 }
  0xfc   : > { %3101 = vtanh.f32 %v3781_v12  ;;  %v2854_v14 = vpop.f32.mrb[6].mxu0 }
  0xfd   : > { %v587_v15 = vpop.f32.mrb[7].mxu0  ;;  %3103 = vtanh.f32 %v3785_v13  ;;  %v3793_v18 = vadd.f32 %v2854_v14, %v3763_v1 }
  0xfe   : > { %v3094_v16 = vpop.eup %3093  ;;  %v3789_v17 = vadd.f32 %v3763_v1, %v587_v15 }
  0xff   : > { %1452 = vrot.lane.b32.xlu0 %v3094_v16, %s3541_s14  ;;  %v3096_v20 = vpop.eup %3095 }
 0x100   : > { %3105 = vtanh.f32 %v3789_v17  ;;  %v2857_v19 = vpop.f32.mrb[8].mxu0 }
 0x101   : > { %v597_v21 = vpop.f32.mrb[9].mxu0  ;;  %3107 = vtanh.f32 %v3793_v18  ;;  %v3808_v26 = vadd.f32 %v2857_v19, %v3763_v1 }
 0x102   : > { %v3098_v22 = vpop.eup %3097  ;;  %v3798_v23 = vadd.f32 %v3763_v1, %v597_v21 }
 0x103   : > { %1456 = vrot.lane.b32.xlu1 %v3098_v22, %s3541_s14  ;;  %1454 = vrot.lane.b32.xlu0 %v3096_v20, %s3541_s14  ;;  %v3100_v31 = vpop.eup %3099 }
 0x104   : > { %3109 = vtanh.f32 %v3798_v23  ;;  %v2860_v28 = vpop.f32.mrb[10].mxu0 }
 0x105   : > { %v607_v32 = vpop.f32.mrb[11].mxu0  ;;  %3111 = vtanh.f32 %v3808_v26  ;;  %v3824_v36 = vadd.f32 %v2860_v28, %v3763_v1 }
 0x106   : > { %v3102_v34 = vpop.eup %3101  ;;  %v3820_v35 = vadd.f32 %v3763_v1, %v607_v32 }
 0x107   : > { %1458 = vrot.lane.b32.xlu1 %v3100_v31, %s3541_s14  ;;  %1460 = vrot.lane.b32.xlu0 %v3102_v34, %s3541_s14  ;;  %v3104_v38 = vpop.eup %3103 }
 0x108   : > { %3113 = vtanh.f32 %v3820_v35  ;;  %v2863_v37 = vpop.f32.mrb[12].mxu0 }
 0x109   : > { %v617_v39 = vpop.f32.mrb[13].mxu0  ;;  %3115 = vtanh.f32 %v3824_v36  ;;  %v3834_v42 = vadd.f32 %v2863_v37, %v3763_v1 }
 0x10a   : > { %v3106_v40 = vpop.eup %3105  ;;  %v3830_v41 = vadd.f32 %v3763_v1, %v617_v39 }
 0x10b   : > { %1462 = vrot.lane.b32.xlu1 %v3104_v38, %s3541_s14  ;;  %1464 = vrot.lane.b32.xlu0 %v3106_v40, %s3541_s14  ;;  %v3108_v44 = vpop.eup %3107 }
 0x10c   : > { %3117 = vtanh.f32 %v3830_v41  ;;  %v2866_v43 = vpop.f32.mrb[14].mxu0 }
 0x10d   : > { %v627_v45 = vpop.f32.mrb[15].mxu0  ;;  %3119 = vtanh.f32 %v3834_v42  ;;  %v3844_v48 = vadd.f32 %v2866_v43, %v3763_v1 }
 0x10e   : > { %v3110_v46 = vpop.eup %3109  ;;  %v3840_v47 = vadd.f32 %v3763_v1, %v627_v45 }
 0x10f   : > { %1466 = vrot.lane.b32.xlu1 %v3108_v44, %s3541_s14  ;;  %1468 = vrot.lane.b32.xlu0 %v3110_v46, %s3541_s14  ;;  %v3112_v50 = vpop.eup %3111 }
 0x110   : > { %3121 = vtanh.f32 %v3840_v47  ;;  %v2869_v49 = vpop.f32.mrb[16].mxu0 }
 0x111   : > { %v637_v51 = vpop.f32.mrb[17].mxu0  ;;  %3123 = vtanh.f32 %v3844_v48  ;;  %v3854_v54 = vadd.f32 %v2869_v49, %v3763_v1 }
 0x112   : > { %v3114_v52 = vpop.eup %3113  ;;  %v3850_v53 = vadd.f32 %v3763_v1, %v637_v51 }
 0x113   : > { %1470 = vrot.lane.b32.xlu1 %v3112_v50, %s3541_s14  ;;  %1472 = vrot.lane.b32.xlu0 %v3114_v52, %s3541_s14  ;;  %v3116_v56 = vpop.eup %3115 }
 0x114   : > { %3125 = vtanh.f32 %v3850_v53  ;;  %v2872_v55 = vpop.f32.mrb[18].mxu0 }
 0x115   : > { %v647_v57 = vpop.f32.mrb[19].mxu0  ;;  %3127 = vtanh.f32 %v3854_v54  ;;  %v3864_v60 = vadd.f32 %v2872_v55, %v3763_v1 }
 0x116   : > { %v3118_v58 = vpop.eup %3117  ;;  %v3860_v59 = vadd.f32 %v3763_v1, %v647_v57 }
 0x117   : > { %1474 = vrot.lane.b32.xlu1 %v3116_v56, %s3541_s14  ;;  %1476 = vrot.lane.b32.xlu0 %v3118_v58, %s3541_s14  ;;  %v3120_v62 = vpop.eup %3119 }
 0x118   : > { %3129 = vtanh.f32 %v3860_v59  ;;  %v2875_v61 = vpop.f32.mrb[20].mxu0 }
 0x119   : > { %v657_v63 = vpop.f32.mrb[21].mxu0  ;;  %3131 = vtanh.f32 %v3864_v60  ;;  %v3874_v3 = vadd.f32 %v2875_v61, %v3763_v1 }
 0x11a   : > { %v3122_v0 = vpop.eup %3121  ;;  %v3870_v2 = vadd.f32 %v3763_v1, %v657_v63 }
 0x11b   : > { %1478 = vrot.lane.b32.xlu1 %v3120_v62, %s3541_s14  ;;  %1480 = vrot.lane.b32.xlu0 %v3122_v0, %s3541_s14  ;;  %v3124_v7 = vpop.eup %3123 }
 0x11c   : > { %3133 = vtanh.f32 %v3870_v2  ;;  %v2878_v6 = vpop.f32.mrb[22].mxu0 }
 0x11d   : > { %v667_v10 = vpop.f32.mrb[23].mxu0  ;;  %3135 = vtanh.f32 %v3874_v3  ;;  %v3884_v15 = vadd.f32 %v2878_v6, %v3763_v1 }
 0x11e   : > { %v3126_v11 = vpop.eup %3125  ;;  %v3880_v14 = vadd.f32 %v3763_v1, %v667_v10 }
 0x11f   : > { %1482 = vrot.lane.b32.xlu1 %v3124_v7, %s3541_s14  ;;  %1484 = vrot.lane.b32.xlu0 %v3126_v11, %s3541_s14  ;;  %v3128_v19 = vpop.eup %3127 }
 0x120   : > { %3137 = vtanh.f32 %v3880_v14  ;;  %v2881_v16 = vpop.f32.mrb[24].mxu0 }
 0x121   : > { %v677_v20 = vpop.f32.mrb[25].mxu0  ;;  %3139 = vtanh.f32 %v3884_v15  ;;  %v3894_v24 = vadd.f32 %v2881_v16, %v3763_v1 }
 0x122   : > { %v3130_v21 = vpop.eup %3129  ;;  %v3890_v22 = vadd.f32 %v3763_v1, %v677_v20 }
 0x123   : > { %1486 = vrot.lane.b32.xlu1 %v3128_v19, %s3541_s14  ;;  %1488 = vrot.lane.b32.xlu0 %v3130_v21, %s3541_s14  ;;  %v3132_v27 = vpop.eup %3131 }
 0x124   : > { %3141 = vtanh.f32 %v3890_v22  ;;  %v2884_v25 = vpop.f32.mrb[26].mxu0 }
 0x125   : > { %v687_v28 = vpop.f32.mrb[27].mxu0  ;;  %3143 = vtanh.f32 %v3894_v24  ;;  %v3904_v31 = vadd.f32 %v2884_v25, %v3763_v1 }
 0x126   : > { %v3134_v29 = vpop.eup %3133  ;;  %v3900_v30 = vadd.f32 %v3763_v1, %v687_v28 }
 0x127   : > { %1490 = vrot.lane.b32.xlu1 %v3132_v27, %s3541_s14  ;;  %1492 = vrot.lane.b32.xlu0 %v3134_v29, %s3541_s14  ;;  %v3136_v33 = vpop.eup %3135 }
 0x128   : > { %3145 = vtanh.f32 %v3900_v30  ;;  %v2887_v32 = vpop.f32.mrb[28].mxu0 }
 0x129   : > { %v697_v34 = vpop.f32.mrb[29].mxu0  ;;  %3147 = vtanh.f32 %v3904_v31  ;;  %v3914_v39 = vadd.f32 %v2887_v32, %v3763_v1 }
 0x12a   : > { %v3138_v37 = vpop.eup %3137  ;;  %v3910_v38 = vadd.f32 %v3763_v1, %v697_v34 }
 0x12b   : > { %1494 = vrot.lane.b32.xlu1 %v3136_v33, %s3541_s14  ;;  %1496 = vrot.lane.b32.xlu0 %v3138_v37, %s3541_s14  ;;  %v3140_v43 = vpop.eup %3139 }
 0x12c   : > { %3149 = vtanh.f32 %v3910_v38  ;;  %v2890_v40 = vpop.f32.mrb[30].mxu0 }
 0x12d   : > { %v707_v44 = vpop.f32.mrb[31].mxu0  ;;  %3151 = vtanh.f32 %v3914_v39  ;;  %v3924_v49 = vadd.f32 %v2890_v40, %v3763_v1 }
 0x12e   : > { %v3142_v45 = vpop.eup %3141  ;;  %v3920_v46 = vadd.f32 %v3763_v1, %v707_v44 }
 0x12f   : > { %1498 = vrot.lane.b32.xlu1 %v3140_v43, %s3541_s14  ;;  %1500 = vrot.lane.b32.xlu0 %v3142_v45, %s3541_s14  ;;  %v3144_v51 = vpop.eup %3143 }
 0x130   : > { %3153 = vtanh.f32 %v3920_v46  ;;  %v2893_v50 = vpop.f32.mrb[32].mxu0 }
 0x131   : > { %v717_v52 = vpop.f32.mrb[33].mxu0  ;;  %3155 = vtanh.f32 %v3924_v49  ;;  %v3934_v57 = vadd.f32 %v2893_v50, %v3763_v1 }
 0x132   : > { %v3146_v55 = vpop.eup %3145  ;;  %v3930_v56 = vadd.f32 %v3763_v1, %v717_v52 }
 0x133   : > { %1502 = vrot.lane.b32.xlu1 %v3144_v51, %s3541_s14  ;;  %1504 = vrot.lane.b32.xlu0 %v3146_v55, %s3541_s14  ;;  %v3148_v61 = vpop.eup %3147 }
 0x134   : > { %3157 = vtanh.f32 %v3930_v56  ;;  %v2896_v58 = vpop.f32.mrb[34].mxu0 }
 0x135   : > { %v727_v62 = vpop.f32.mrb[35].mxu0  ;;  %3159 = vtanh.f32 %v3934_v57  ;;  %v3944_v6 = vadd.f32 %v2896_v58, %v3763_v1 }
 0x136   : > { %v3150_v63 = vpop.eup %3149  ;;  %v3940_v0 = vadd.f32 %v3763_v1, %v727_v62 }
 0x137   : > { %1506 = vrot.lane.b32.xlu1 %v3148_v61, %s3541_s14  ;;  %1508 = vrot.lane.b32.xlu0 %v3150_v63, %s3541_s14  ;;  %v3152_v10 = vpop.eup %3151 }
 0x138   : > { %3161 = vtanh.f32 %v3940_v0  ;;  %v2899_v7 = vpop.f32.mrb[36].mxu0 }
 0x139   : > { %v737_v11 = vpop.f32.mrb[37].mxu0  ;;  %3163 = vtanh.f32 %v3944_v6  ;;  %v3954_v20 = vadd.f32 %v2899_v7, %v3763_v1 }
 0x13a   : > { %v3154_v16 = vpop.eup %3153  ;;  %v3950_v19 = vadd.f32 %v3763_v1, %v737_v11 }
 0x13b   : > { %1510 = vrot.lane.b32.xlu1 %v3152_v10, %s3541_s14  ;;  %1512 = vrot.lane.b32.xlu0 %v3154_v16, %s3541_s14  ;;  %v3156_v25 = vpop.eup %3155 }
 0x13c   : > { %3165 = vtanh.f32 %v3950_v19  ;;  %v2902_v21 = vpop.f32.mrb[38].mxu0 }
 0x13d   : > { %v747_v27 = vpop.f32.mrb[39].mxu0  ;;  %3167 = vtanh.f32 %v3954_v20  ;;  %v3964_v32 = vadd.f32 %v2902_v21, %v3763_v1 }
 0x13e   : > { %v3158_v28 = vpop.eup %3157  ;;  %v3960_v29 = vadd.f32 %v3763_v1, %v747_v27 }
 0x13f   : > { %1514 = vrot.lane.b32.xlu1 %v3156_v25, %s3541_s14  ;;  %1516 = vrot.lane.b32.xlu0 %v3158_v28, %s3541_s14  ;;  %v3160_v34 = vpop.eup %3159  ;;  %v2574_v25 = vmul.f32 -1.442695, %v3769_v5 }
 0x140   : > { %3169 = vtanh.f32 %v3960_v29  ;;  %v2905_v33 = vpop.f32.mrb[40].mxu0 }
 0x141   : > { %v757_v37 = vpop.f32.mrb[41].mxu0  ;;  %3171 = vtanh.f32 %v3964_v32  ;;  %v3974_v44 = vadd.f32 %v2905_v33, %v3763_v1  ;;  %v2573_v33 = vmul.f32 -1.442695, %v3766_v4 }
 0x142   : > { %v3162_v40 = vpop.eup %3161  ;;  %v3970_v43 = vadd.f32 %v3763_v1, %v757_v37 }
 0x143   : > { %1518 = vrot.lane.b32.xlu1 %v3160_v34, %s3541_s14  ;;  %1520 = vrot.lane.b32.xlu0 %v3162_v40, %s3541_s14  ;;  %v3164_v50 = vpop.eup %3163 }
 0x144   : > { %3173 = vtanh.f32 %v3970_v43  ;;  %v2908_v45 = vpop.f32.mrb[42].mxu0 }
 0x145   : > { %v767_v51 = vpop.f32.mrb[43].mxu0  ;;  %3175 = vtanh.f32 %v3974_v44  ;;  %v3984_v58 = vadd.f32 %v2908_v45, %v3763_v1  ;;  %v2576_v45 = vmul.f32 -1.442695, %v3777_v9 }
 0x146   : > { %v3166_v52 = vpop.eup %3165  ;;  %v3980_v55 = vadd.f32 %v3763_v1, %v767_v51  ;;  %v2575_v51 = vmul.f32 -1.442695, %v3773_v8 }
 0x147   : > { %1522 = vrot.lane.b32.xlu1 %v3164_v50, %s3541_s14  ;;  %1524 = vrot.lane.b32.xlu0 %v3166_v52, %s3541_s14  ;;  %v3168_v62 = vpop.eup %3167 }
 0x148   : > { %3177 = vtanh.f32 %v3980_v55  ;;  %v2911_v61 = vpop.f32.mrb[44].mxu0 }
 0x149   : > { %v777_v63 = vpop.f32.mrb[45].mxu0  ;;  %3179 = vtanh.f32 %v3984_v58  ;;  %v3994_v11 = vadd.f32 %v2911_v61, %v3763_v1 }
 0x14a   : > { %v3170_v7 = vpop.eup %3169  ;;  %v3990_v10 = vadd.f32 %v3763_v1, %v777_v63  ;;  %v2578_v63 = vmul.f32 -1.442695, %v3785_v13 }
 0x14b   : > { %1526 = vrot.lane.b32.xlu1 %v3168_v62, %s3541_s14  ;;  %1528 = vrot.lane.b32.xlu0 %v3170_v7, %s3541_s14  ;;  %v3172_v21 = vpop.eup %3171 }
 0x14c   : > { %3181 = vtanh.f32 %v3990_v10  ;;  %v2914_v16 = vpop.f32.mrb[46].mxu0 }
 0x14d   : > { %v787_v27 = vpop.f32.mrb[47].mxu0  ;;  %3183 = vtanh.f32 %v3994_v11  ;;  %v4006_v37 = vadd.f32 %v2914_v16, %v3763_v1  ;;  %v2577_v16 = vmul.f32 -1.442695, %v3781_v12 }
 0x14e   : > { %v3174_v28 = vpop.eup %3173  ;;  %v4002_v34 = vadd.f32 %v3763_v1, %v787_v27 }
 0x14f   : > { %1530 = vrot.lane.b32.xlu1 %v3172_v21, %s3541_s14  ;;  %1532 = vrot.lane.b32.xlu0 %v3174_v28, %s3541_s14  ;;  %v3176_v5 = vpop.eup %3175  ;;  %v2580_v28 = vmul.f32 -1.442695, %v3793_v18 }
 0x150   : > { %3185 = vtanh.f32 %v4002_v34  ;;  %v2917_v40 = vpop.f32.mrb[48].mxu0 }
 0x151   : > { %3187 = vpow2.f32 %v2574_v25  ;;  %v797_v4 = vpop.f32.mrb[49].mxu0  ;;  %v4018_v61 = vadd.f32 %v2917_v40, %v3763_v1  ;;  %v2579_v40 = vmul.f32 -1.442695, %v3789_v17 }
 0x152   : > { %v3178_v50 = vpop.eup %3177  ;;  %3189 = vpow2.f32 %v2573_v33  ;;  %v4014_v52 = vadd.f32 %v3763_v1, %v797_v4 }
 0x153   : > { %3191 = vtanh.f32 %v4006_v37  ;;  %1534 = vrot.lane.b32.xlu1 %v3176_v5, %s3541_s14  ;;  %1536 = vrot.lane.b32.xlu0 %v3178_v50, %s3541_s14  ;;  %v3180_v62 = vpop.eup %3179 }
 0x154   : > { %3193 = vtanh.f32 %v4014_v52  ;;  %v2920_v9 = vpop.f32.mrb[50].mxu0 }
 0x155   : > { %3195 = vpow2.f32 %v2576_v45  ;;  %v807_v8 = vpop.f32.mrb[51].mxu0  ;;  %v4030_v25 = vadd.f32 %v2920_v9, %v3763_v1 }
 0x156   : > { %v3182_v7 = vpop.eup %3181  ;;  %3197 = vpow2.f32 %v2575_v51  ;;  %v4026_v21 = vadd.f32 %v3763_v1, %v807_v8  ;;  %v2582_v51 = vmul.f32 -1.442695, %v3808_v26 }
 0x157   : > { %3199 = vtanh.f32 %v4018_v61  ;;  %4468 = vst [vmem:[#allocation6_spill] sm:$0xff] %v4030_v25  ;;  %1538 = vrot.lane.b32.xlu1 %v3180_v62, %s3541_s14  ;;  %1540 = vrot.lane.b32.xlu0 %v3182_v7, %s3541_s14  ;;  %v3184_v27 = vpop.eup %3183 }
 0x158   : > { %4467 = vst [vmem:[#allocation5_spill] sm:$0xff] %v4026_v21  ;;  %3201 = vtanh.f32 %v4026_v21  ;;  %v2923_v13 = vpop.f32.mrb[52].mxu0 }
 0x159   : > { %3203 = vpow2.f32 %v2578_v63  ;;  %v817_v12 = vpop.f32.mrb[53].mxu0  ;;  %v4044_v4 = vadd.f32 %v2923_v13, %v3763_v1  ;;  %v2581_v63 = vmul.f32 -1.442695, %v3798_v23 }
 0x15a   : > { %v3186_v33 = vpop.eup %3185  ;;  %3205 = vpow2.f32 %v2577_v16  ;;  %v4038_v5 = vadd.f32 %v3763_v1, %v817_v12 }
 0x15b   : > { %v4040_v45 = vpop.eup %3187  ;;  %3207 = vtanh.f32 %v4030_v25  ;;  %4470 = vst [vmem:[#allocation8_spill] sm:$0xff] %v4044_v4  ;;  %1542 = vrot.lane.b32.xlu1 %v3184_v27, %s3541_s14  ;;  %1544 = vrot.lane.b32.xlu0 %v3186_v33, %s3541_s14  ;;  %v2584_v27 = vmul.f32 -1.442695, %v3824_v36  ;;  %v2583_v33 = vmul.f32 -1.442695, %v3820_v35 }
 0x15c   : > { %4469 = vst [vmem:[#allocation7_spill] sm:$0xff] %v4038_v5  ;;  %v4048_v18 = vpop.eup %3189  ;;  %3209 = vtanh.f32 %v4038_v5  ;;  %v2926_v50 = vpop.f32.mrb[54].mxu0  ;;  %v2586_v35 = vmul.f32 -1.442695, %v3834_v42 }
 0x15d   : > { %v3192_v17 = vpop.eup %3191  ;;  %3211 = vpow2.f32 %v2580_v28  ;;  %v827_v9 = vpop.f32.mrb[55].mxu0  ;;  %v4060_v16 = vadd.f32 %v2926_v50, %v3763_v1 }
 0x15e   : > { %v3194_v62 = vpop.eup %3193  ;;  %3213 = vpow2.f32 %v2579_v40  ;;  %v4054_v8 = vadd.f32 %v3763_v1, %v827_v9 }
 0x15f   : > { %v4056_v7 = vpop.eup %3195  ;;  %3215 = vtanh.f32 %v4044_v4  ;;  %4472 = vst [vmem:[#allocation10_spill] sm:$0xff] %v4060_v16  ;;  %1546 = vrot.lane.b32.xlu1 %v3192_v17, %s3541_s14  ;;  %1548 = vrot.lane.b32.xlu0 %v3194_v62, %s3541_s14 }
 0x160   : > { %4471 = vst [vmem:[#allocation9_spill] sm:$0xff] %v4054_v8  ;;  %v4064_v26 = vpop.eup %3197  ;;  %3217 = vtanh.f32 %v4054_v8  ;;  %v2929_v13 = vpop.f32.mrb[56].mxu0  ;;  %v2594_v8 = vmul.f32 -1.442695, %v3874_v3 }
 0x161   : > { %v3200_v23 = vpop.eup %3199  ;;  %3219 = vpow2.f32 %v2582_v51  ;;  %v837_v28 = vpop.f32.mrb[57].mxu0  ;;  %v4076_v17 = vadd.f32 %v2929_v13, %v3763_v1 }
 0x162   : > { %v3202_v12 = vpop.eup %3201  ;;  %3221 = vpow2.f32 %v2581_v63  ;;  %v4070_v40 = vadd.f32 %v3763_v1, %v837_v28  ;;  %v2585_v28 = vmul.f32 -1.442695, %v3830_v41  ;;  %v2588_v41 = vmul.f32 -1.442695, %v3844_v48 }
 0x163   : > { %v4072_v50 = vpop.eup %3203  ;;  %3223 = vtanh.f32 %v4060_v16  ;;  %4474 = vst [vmem:[#allocation12_spill] sm:$0xff] %v4076_v17  ;;  %1550 = vrot.lane.b32.xlu1 %v3200_v23, %s3541_s14  ;;  %1552 = vrot.lane.b32.xlu0 %v3202_v12, %s3541_s14 }
 0x164   : > { %4473 = vst [vmem:[#allocation11_spill] sm:$0xff] %v4070_v40  ;;  %v3206_v36 = vpop.eup %3205  ;;  %3225 = vtanh.f32 %v4070_v40  ;;  %v2932_v51 = vpop.f32.mrb[58].mxu0 }
 0x165   : > { %v3208_v9 = vpop.eup %3207  ;;  %3227 = vpow2.f32 %v2584_v27  ;;  %v847_v62 = vpop.f32.mrb[59].mxu0  ;;  %v4090_v23 = vadd.f32 %v2932_v51, %v3763_v1 }
 0x166   : > { %v3210_v63 = vpop.eup %3209  ;;  %3229 = vpow2.f32 %v2583_v33  ;;  %v4084_v13 = vadd.f32 %v3763_v1, %v847_v62 }
 0x167   : > { %v4086_v16 = vpop.eup %3211  ;;  %3231 = vtanh.f32 %v4076_v17  ;;  %4476 = vst [vmem:[#allocation14_spill] sm:$0xff] %v4090_v23  ;;  %1554 = vrot.lane.b32.xlu1 %v3208_v9, %s3541_s14  ;;  %1556 = vrot.lane.b32.xlu0 %v3210_v63, %s3541_s14  ;;  %v2587_v17 = vmul.f32 -1.442695, %v3840_v47  ;;  %v2590_v47 = vmul.f32 -1.442695, %v3854_v54 }
 0x168   : > { %4475 = vst [vmem:[#allocation13_spill] sm:$0xff] %v4084_v13  ;;  %v3214_v42 = vpop.eup %3213  ;;  %3233 = vtanh.f32 %v4084_v13  ;;  %v2935_v27 = vpop.f32.mrb[60].mxu0 }
 0x169   : > { %v3216_v12 = vpop.eup %3215  ;;  %3235 = vpow2.f32 %v2586_v35  ;;  %v857_v33 = vpop.f32.mrb[61].mxu0  ;;  %v4104_v9 = vadd.f32 %v2935_v27, %v3763_v1 }
 0x16a   : > { %v3218_v62 = vpop.eup %3217  ;;  %3237 = vpow2.f32 %v2585_v28  ;;  %v4098_v51 = vadd.f32 %v3763_v1, %v857_v33 }
 0x16b   : > { %v4100_v40 = vpop.eup %3219  ;;  %3239 = vtanh.f32 %v4090_v23  ;;  %4478 = vst [vmem:[#allocation16_spill] sm:$0xff] %v4104_v9  ;;  %1558 = vrot.lane.b32.xlu1 %v3216_v12, %s3541_s14  ;;  %1560 = vrot.lane.b32.xlu0 %v3218_v62, %s3541_s14 }
 0x16c   : > { %4477 = vst [vmem:[#allocation15_spill] sm:$0xff] %v4098_v51  ;;  %v3222_v48 = vpop.eup %3221  ;;  %3241 = vtanh.f32 %v4098_v51  ;;  %v2938_v35 = vpop.f32.mrb[62].mxu0  ;;  %v1074_v51 = vadd.f32 1.0, %v3214_v42 }
 0x16d   : > { %v3224_v63 = vpop.eup %3223  ;;  %3243 = vpow2.f32 %v2588_v41  ;;  %v867_v28 = vpop.f32.mrb[63].mxu0  ;;  %v4111_v23 = vadd.f32 %v2938_v35, %v3763_v1  ;;  %v1068_v41 = vadd.f32 1.0, %v4048_v18  ;;  %v1072_v18 = vadd.f32 1.0, %v3206_v36 }
 0x16e   : > { %v3226_v33 = vpop.eup %3225  ;;  %3245 = vpow2.f32 %v2587_v17  ;;  %v4114_v27 = vadd.f32 %v3763_v1, %v867_v28  ;;  %v1070_v17 = vadd.f32 1.0, %v4064_v26  ;;  %v1069_v1 = vadd.f32 1.0, %v4040_v45 }
 0x16f   : > { %4479 = vst [vmem:[#allocation17_spill] sm:$0xff] %v4111_v23  ;;  %v4116_v12 = vpop.eup %3227  ;;  %3247 = vtanh.f32 %v4104_v9  ;;  %1562 = vrot.lane.b32.xlu1 %v3224_v63, %s3541_s14  ;;  %1564 = vrot.lane.b32.xlu0 %v3226_v33, %s3541_s14  ;;  %v1071_v9 = vadd.f32 1.0, %v4056_v7  ;;  %v1073_v26 = vadd.f32 1.0, %v4072_v50  ;;  %v1075_v36 = vadd.f32 1.0, %v4086_v16 }
 0x170   : > { %4480 = vst [vmem:[#allocation18_spill] sm:$0xff] %v4114_v27  ;;  %v3230_v54 = vpop.eup %3229  ;;  %3249 = vtanh.f32 %v4114_v27  ;;  %v1076_v50 = vadd.f32 1.0, %v3222_v48  ;;  %v1077_v16 = vadd.f32 1.0, %v4100_v40  ;;  %v1079_v40 = vadd.f32 1.0, %v4116_v12 }
 0x171   : > { %v3232_v62 = vpop.eup %3231  ;;  %3251 = vpow2.f32 %v2590_v47  ;;  %v1453_v35 = vpop.permute.xlu0 %1452  ;;  %v1078_v48 = vadd.f32 1.0, %v3230_v54 }
 0x172   : > { %v3234_v28 = vpop.eup %3233  ;;  %3253 = vtanh.f32 %v4111_v23  ;;  %v2589_v23 = vmul.f32 -1.442695, %v3850_v53 }
 0x173   : > { %v3236_v63 = vpop.eup %3235  ;;  %3255 = vrcp.f32 %v1068_v41  ;;  %1566 = vrot.lane.b32.xlu1 %v3232_v62, %s3541_s14  ;;  %1568 = vrot.lane.b32.xlu0 %v3234_v28, %s3541_s14  ;;  %v2592_v62 = vmul.f32 -1.442695, %v3864_v60 }
 0x174   : > { %v3238_v33 = vpop.eup %3237  ;;  %3257 = vrcp.f32 %v1070_v17 }
 0x175   : > { %v3240_v47 = vpop.eup %3239  ;;  %v1457_v27 = vpop.permute.xlu1 %1456  ;;  %3259 = vrcp.f32 %v1069_v1 }
 0x176   : > { %v1455_v45 = vpop.permute.xlu0 %1454  ;;  %v3242_v13 = vpop.eup %3241  ;;  %3261 = vrcp.f32 %v1071_v9  ;;  %v2591_v9 = vmul.f32 -1.442695, %v3860_v59 }
 0x177   : > { %v4131_v7 = vpop.eup %3243  ;;  %1570 = vrot.lane.b32.xlu1 %v3240_v47, %s3541_s14  ;;  %1572 = vrot.lane.b32.xlu0 %v3242_v13, %s3541_s14  ;;  %3263 = vrcp.f32 %v1072_v18 }
 0x178   : > { %v3246_v41 = vpop.eup %3245  ;;  %3265 = vrcp.f32 %v1073_v26 }
 0x179   : > { %v3248_v17 = vpop.eup %3247  ;;  %v1459_v42 = vpop.permute.xlu1 %1458  ;;  %3267 = vrcp.f32 %v1074_v51  ;;  %v2593_v51 = vmul.f32 -1.442695, %v3870_v2 }
 0x17a   : > { %v1461_v1 = vpop.permute.xlu0 %1460  ;;  %v3250_v53 = vpop.eup %3249  ;;  %3269 = vpow2.f32 %v2589_v23 }
 0x17b   : > { %v4138_v28 = vpop.eup %3251  ;;  %1574 = vrot.lane.b32.xlu1 %v3248_v17, %s3541_s14  ;;  %1576 = vrot.lane.b32.xlu0 %v3250_v53, %s3541_s14  ;;  %3271 = vrcp.f32 %v1075_v36  ;;  %v1081_v36 = vadd.f32 1.0, %v3236_v63 }
 0x17c   : > { %v3254_v13 = vpop.eup %3253  ;;  %3273 = vrcp.f32 %v1076_v50 }
 0x17d   : > { %v3256_v60 = vpop.eup %3255  ;;  %3275 = vpow2.f32 %v2592_v62  ;;  %v1463_v18 = vpop.permute.xlu1 %1462  ;;  %v1080_v62 = vadd.f32 1.0, %v3238_v33 }
 0x17e   : > { %v1465_v23 = vpop.permute.xlu0 %1464  ;;  %v3258_v26 = vpop.eup %3257  ;;  %3277 = vpow2.f32 %v2591_v9  ;;  %v1324_v59 = vsub.f32 1.0, %v3256_v60 }
 0x17f   : > { %v3260_v47 = vpop.eup %3259  ;;  %v1326_v17 = vsub.f32 1.0, %v3258_v26  ;;  %1578 = vrot.lane.b32.xlu1 %v3254_v13, %s3541_s14  ;;  %3279 = vrcp.f32 %v1077_v16  ;;  %v2595_v13 = vmul.f32 -1.442695, %v3880_v14 }
 0x180   : > { %v3262_v50 = vpop.eup %3261  ;;  %v1644_v54 = vmul.f32 %v1453_v35, %v1324_v59  ;;  %v1325_v53 = vsub.f32 1.0, %v3260_v47  ;;  %3281 = vrcp.f32 %v1078_v48  ;;  %v1082_v48 = vadd.f32 1.0, %v3246_v41 }
 0x181   : > { %v3264_v2 = vpop.eup %3263  ;;  %3283 = vpow2.f32 %v2593_v51  ;;  %v1646_v9 = vmul.f32 %v1457_v27, %v1326_v17  ;;  %v1327_v60 = vsub.f32 1.0, %v3262_v50  ;;  %v1467_v4 = vpop.permute.xlu1 %1466  ;;  %v2596_v47 = vmul.f32 -1.442695, %v3884_v15 }
 0x182   : > { %v1469_v5 = vpop.permute.xlu0 %1468  ;;  %v3266_v26 = vpop.eup %3265  ;;  %v1708_v16 = vmax.f32 %v1644_v54, 0.0  ;;  %v1645_v25 = vmul.f32 %v1455_v45, %v1325_v53  ;;  %v1328_v12 = vsub.f32 1.0, %v3264_v2  ;;  %3285 = vrcp.f32 %v1079_v40 }
 0x183   : > { %v3268_v63 = vpop.eup %3267  ;;  %v1710_v21 = vmax.f32 %v1646_v9, 0.0  ;;  %v1647_v35 = vmul.f32 %v1459_v42, %v1327_v60  ;;  %v1329_v27 = vsub.f32 1.0, %v3266_v26  ;;  %3287 = vrcp.f32 %v1080_v62 }
 0x184   : > { %v3270_v33 = vpop.eup %3269  ;;  %v1709_v59 = vmax.f32 %v1645_v25, 0.0  ;;  %2947 = vmatprep.mubr.msk.f32.mxu1 %vm1783_vm1, %v1708_v16  ;;  %v1648_v3 = vmul.f32 %v1461_v1, %v1328_v12  ;;  %3289 = vpow2.f32 %v2594_v8  ;;  %v1330_v14 = vsub.f32 1.0, %v3268_v63 }
 0x185   : > { %v3272_v51 = vpop.eup %3271  ;;  %v1471_v17 = vpop.permute.xlu1 %1470  ;;  %3291 = vpow2.f32 %v2595_v13  ;;  %v2597_v42 = vmul.f32 -1.442695, %v3890_v22  ;;  %v1711_v40 = vmax.f32 %v1647_v35, 0.0  ;;  %v1649_v25 = vmul.f32 %v1463_v18, %v1329_v27 }
 0x186   : > { %v1473_v45 = vpop.permute.xlu0 %1472  ;;  %v3274_v50 = vpop.eup %3273  ;;  %2948 = vmatmul.mubr.msk.f32.vlgmr.msra.gmra.mrb[0].mxu1 %vm1783_vm1, %v1709_v59  ;;  %v1712_v54 = vmax.f32 %v1648_v3, 0.0  ;;  %v1650_v1 = vmul.f32 %v1465_v23, %v1330_v14  ;;  %3293 = vrcp.f32 %v1081_v36  ;;  %v1083_v8 = vadd.f32 1.0, %v4131_v7 }
 0x187   : > { %v3276_v41 = vpop.eup %3275  ;;  %2950 = vmatprep.mubr.msk.f32.mxu1 %vm1783_vm1, %v1710_v21  ;;  %v1331_v53 = vsub.f32 1.0, %v3272_v51  ;;  %3295 = vrcp.f32 %v1082_v48  ;;  %v1084_v62 = vadd.f32 1.0, %v3270_v33  ;;  %v2598_v22 = vmul.f32 -1.442695, %v3894_v24 }
 0x188   : > { %v3278_v15 = vpop.eup %3277  ;;  %3297 = vpow2.f32 %v2596_v47  ;;  %v1332_v9 = vsub.f32 1.0, %v3274_v50  ;;  %v2599_v13 = vmul.f32 -1.442695, %v3900_v30  ;;  %v1713_v21 = vmax.f32 %v1649_v25, 0.0 }
 0x189   : > { %v3280_v2 = vpop.eup %3279  ;;  %v1475_v60 = vpop.permute.xlu1 %1474  ;;  %3299 = vpow2.f32 %v2597_v42  ;;  %v1651_v23 = vmul.f32 %v1467_v4, %v1331_v53  ;;  %v1714_v36 = vmax.f32 %v1650_v1, 0.0  ;;  %v1085_v12 = vadd.f32 1.0, %v4138_v28 }
 0x18a   : > { %v1477_v26 = vpop.permute.xlu0 %1476  ;;  %v3282_v18 = vpop.eup %3281  ;;  %2951 = vmatmul.mubr.msk.f32.gmra.mrb[2].mxu1 %vm1783_vm1, %v1711_v40  ;;  %v1652_v16 = vmul.f32 %v1469_v5, %v1332_v9  ;;  %3301 = vrcp.f32 %v1083_v8  ;;  %v1333_v24 = vsub.f32 1.0, %v3280_v2  ;;  %v1086_v63 = vadd.f32 1.0, %v3278_v15 }
 0x18b   : > { %v3284_v7 = vpop.eup %3283  ;;  %2953 = vmatprep.mubr.msk.f32.mxu1 %vm1783_vm1, %v1712_v54  ;;  %3303 = vrcp.f32 %v1084_v62  ;;  %v2600_v48 = vmul.f32 -1.442695, %v3904_v31  ;;  %v1334_v30 = vsub.f32 1.0, %v3282_v18  ;;  %v2601_v4 = vmul.f32 -1.442695, %v3910_v38 }
 0x18c   : > { %v3286_v35 = vpop.eup %3285  ;;  %3305 = vpow2.f32 %v2598_v22  ;;  %v1715_v27 = vmax.f32 %v1651_v23, 0.0  ;;  %v1653_v5 = vmul.f32 %v1471_v17, %v1333_v24  ;;  %v1716_v28 = vmax.f32 %v1652_v16, 0.0 }
 0x18d   : > { %v1479_v33 = vpop.permute.xlu1 %1478  ;;  %v3288_v3 = vpop.eup %3287  ;;  %3307 = vpow2.f32 %v2599_v13  ;;  %v1654_v47 = vmul.f32 %v1473_v45, %v1334_v30  ;;  %v1087_v14 = vadd.f32 1.0, %v3276_v41  ;;  %v1335_v31 = vsub.f32 1.0, %v3286_v35 }
 0x18e   : > { %v1481_v59 = vpop.permute.xlu0 %1480  ;;  %2954 = vmatmul.mubr.msk.f32.gmra.mrb[4].mxu1 %vm1783_vm1, %v1713_v21  ;;  %v3290_v51 = vpop.eup %3289  ;;  %3309 = vrcp.f32 %v1085_v12  ;;  %v1088_v42 = vadd.f32 1.0, %v3284_v7  ;;  %v2602_v25 = vmul.f32 -1.442695, %v3914_v39  ;;  %v1336_v38 = vsub.f32 1.0, %v3288_v3 }
 0x18f   : > { %2956 = vmatprep.mubr.msk.f32.mxu1 %vm1783_vm1, %v1714_v36  ;;  %v3292_v50 = vpop.eup %3291  ;;  %3311 = vrcp.f32 %v1086_v63  ;;  %v2603_v17 = vmul.f32 -1.442695, %v3920_v46  ;;  %v1717_v15 = vmax.f32 %v1653_v5, 0.0  ;;  %v1655_v45 = vmul.f32 %v1475_v60, %v1335_v31 }
 0x190   : > { %v3294_v40 = vpop.eup %3293  ;;  %3313 = vpow2.f32 %v2600_v48  ;;  %v1718_v53 = vmax.f32 %v1654_v47, 0.0  ;;  %v1656_v62 = vmul.f32 %v1477_v26, %v1336_v38  ;;  %v1089_v2 = vadd.f32 1.0, %v3290_v51 }
 0x191   : > { %v1483_v54 = vpop.permute.xlu1 %1482  ;;  %v3296_v8 = vpop.eup %3295  ;;  %3315 = vpow2.f32 %v2601_v4  ;;  %v1337_v39 = vsub.f32 1.0, %v3294_v40  ;;  %v1090_v9 = vadd.f32 1.0, %v3292_v50  ;;  %v2604_v13 = vmul.f32 -1.442695, %v3924_v49 }
 0x192   : > { %v1485_v1 = vpop.permute.xlu0 %1484  ;;  %2957 = vmatmul.mubr.msk.f32.gmra.mrb[6].mxu1 %vm1783_vm1, %v1715_v27  ;;  %v3298_v41 = vpop.eup %3297  ;;  %3317 = vrcp.f32 %v1087_v14  ;;  %v1338_v46 = vsub.f32 1.0, %v3296_v8  ;;  %v2605_v60 = vmul.f32 -1.442695, %v3930_v56  ;;  %v1719_v36 = vmax.f32 %v1655_v45, 0.0 }
 0x193   : > { %2959 = vmatprep.mubr.msk.f32.mxu1 %vm1783_vm1, %v1716_v28  ;;  %v3300_v22 = vpop.eup %3299  ;;  %3319 = vrcp.f32 %v1088_v42  ;;  %v1657_v26 = vmul.f32 %v1479_v33, %v1337_v39  ;;  %v1720_v12 = vmax.f32 %v1656_v62, 0.0  ;;  %v1091_v63 = vadd.f32 1.0, %v3298_v41 }
 0x194   : > { %v3302_v18 = vpop.eup %3301  ;;  %3321 = vpow2.f32 %v2602_v25  ;;  %v1658_v24 = vmul.f32 %v1481_v59, %v1338_v46  ;;  %v1092_v48 = vadd.f32 1.0, %v3300_v22  ;;  %v2606_v3 = vmul.f32 -1.442695, %v3934_v57 }
 0x195   : > { %v1487_v21 = vpop.permute.xlu1 %1486  ;;  %v3304_v7 = vpop.eup %3303  ;;  %3323 = vpow2.f32 %v2603_v17  ;;  %v1339_v49 = vsub.f32 1.0, %v3302_v18  ;;  %v2607_v33 = vmul.f32 -1.442695, %v3940_v0  ;;  %v1721_v51 = vmax.f32 %v1657_v26, 0.0 }
 0x196   : > { %v1489_v23 = vpop.permute.xlu0 %1488  ;;  %2960 = vmatmul.mubr.msk.f32.gmra.mrb[8].mxu1 %vm1783_vm1, %v1717_v15  ;;  %v3306_v16 = vpop.eup %3305  ;;  %3325 = vrcp.f32 %v1089_v2  ;;  %v1340_v56 = vsub.f32 1.0, %v3304_v7  ;;  %v1722_v47 = vmax.f32 %v1658_v24, 0.0  ;;  %v2608_v25 = vmul.f32 -1.442695, %v3944_v6 }
 0x197   : > { %2962 = vmatprep.mubr.msk.f32.mxu1 %vm1783_vm1, %v1718_v53  ;;  %v3308_v35 = vpop.eup %3307  ;;  %3327 = vrcp.f32 %v1090_v9  ;;  %v1659_v59 = vmul.f32 %v1483_v54, %v1339_v49  ;;  %v1093_v50 = vadd.f32 1.0, %v3306_v16  ;;  %v2609_v54 = vmul.f32 -1.442695, %v3950_v19 }
 0x198   : > { %v3310_v30 = vpop.eup %3309  ;;  %3329 = vpow2.f32 %v2604_v13  ;;  %v1660_v14 = vmul.f32 %v1485_v1, %v1340_v56  ;;  %v1094_v42 = vadd.f32 1.0, %v3308_v35  ;;  %v2610_v9 = vmul.f32 -1.442695, %v3954_v20 }
 0x199   : > { %v1491_v4 = vpop.permute.xlu1 %1490  ;;  %v3312_v5 = vpop.eup %3311  ;;  %3331 = vpow2.f32 %v2605_v60  ;;  %v1341_v57 = vsub.f32 1.0, %v3310_v30  ;;  %v1723_v15 = vmax.f32 %v1659_v59, 0.0  ;;  %v2612_v35 = vmul.f32 -1.442695, %v3964_v32 }
 0x19a   : > { %v1493_v27 = vpop.permute.xlu0 %1492  ;;  %2963 = vmatmul.mubr.msk.f32.gmra.mrb[10].mxu1 %vm1783_vm1, %v1719_v36  ;;  %v3314_v28 = vpop.eup %3313  ;;  %3333 = vrcp.f32 %v1091_v63  ;;  %v1342_v0 = vsub.f32 1.0, %v3312_v5  ;;  %v1724_v41 = vmax.f32 %v1660_v14, 0.0  ;;  %v2614_v14 = vmul.f32 -1.442695, %v3974_v44 }
 0x19b   : > { %2965 = vmatprep.mubr.msk.f32.mxu1 %vm1783_vm1, %v1720_v12  ;;  %v3316_v31 = vpop.eup %3315  ;;  %3335 = vrcp.f32 %v1092_v48  ;;  %v1661_v1 = vmul.f32 %v1487_v21, %v1341_v57  ;;  %v1095_v62 = vadd.f32 1.0, %v3314_v28  ;;  %v2611_v21 = vmul.f32 -1.442695, %v3960_v29 }
 0x19c   : > { %v3318_v40 = vpop.eup %3317  ;;  %3337 = vpow2.f32 %v2606_v3  ;;  %v1662_v53 = vmul.f32 %v1489_v23, %v1342_v0  ;;  %v1096_v22 = vadd.f32 1.0, %v3316_v31  ;;  %v2613_v3 = vmul.f32 -1.442695, %v3970_v43 }
 0x19d   : > { %v1495_v38 = vpop.permute.xlu1 %1494  ;;  %v3320_v17 = vpop.eup %3319  ;;  %3339 = vpow2.f32 %v2607_v33  ;;  %v1343_v6 = vsub.f32 1.0, %v3318_v40  ;;  %v1725_v7 = vmax.f32 %v1661_v1, 0.0 }
 0x19e   : > { %v1497_v8 = vpop.permute.xlu0 %1496  ;;  %2966 = vmatmul.mubr.msk.f32.gmra.mrb[12].mxu1 %vm1783_vm1, %v1721_v51  ;;  %v3322_v45 = vpop.eup %3321  ;;  %3341 = vrcp.f32 %v1093_v50  ;;  %v1344_v19 = vsub.f32 1.0, %v3320_v17  ;;  %v1726_v36 = vmax.f32 %v1662_v53, 0.0 }
 0x19f   : > { %2968 = vmatprep.mubr.msk.f32.mxu1 %vm1783_vm1, %v1722_v47  ;;  %v3324_v2 = vpop.eup %3323  ;;  %3343 = vrcp.f32 %v1094_v42  ;;  %v1663_v23 = vmul.f32 %v1491_v4, %v1343_v6  ;;  %v1097_v16 = vadd.f32 1.0, %v3322_v45  ;;  %v2615_v42 = vmul.f32 -1.442695, %v3980_v55 }
 0x1a0   : > { %v3326_v39 = vpop.eup %3325  ;;  %3345 = vpow2.f32 %v2608_v25  ;;  %v1664_v26 = vmul.f32 %v1493_v27, %v1344_v19  ;;  %v1098_v24 = vadd.f32 1.0, %v3324_v2  ;;  %v2616_v45 = vmul.f32 -1.442695, %v3984_v58 }
 0x1a1   : > { %v1499_v18 = vpop.permute.xlu1 %1498  ;;  %v3328_v46 = vpop.eup %3327  ;;  %3347 = vpow2.f32 %v2609_v54  ;;  %v1345_v20 = vsub.f32 1.0, %v3326_v39  ;;  %v1727_v56 = vmax.f32 %v1663_v23, 0.0  ;;  %v2617_v2 = vmul.f32 -1.442695, %v3990_v10 }
 0x1a2   : > { %v1501_v13 = vpop.permute.xlu0 %1500  ;;  %2969 = vmatmul.mubr.msk.f32.gmra.mrb[14].mxu1 %vm1783_vm1, %v1723_v15  ;;  %v3330_v60 = vpop.eup %3329  ;;  %3349 = vrcp.f32 %v1095_v62  ;;  %v1346_v29 = vsub.f32 1.0, %v3328_v46  ;;  %v1728_v5 = vmax.f32 %v1664_v26, 0.0  ;;  %v2619_v26 = vmul.f32 -1.442695, %v4002_v34 }
 0x1a3   : > { %2971 = vmatprep.mubr.msk.f32.mxu1 %vm1783_vm1, %v1724_v41  ;;  %v3332_v12 = vpop.eup %3331  ;;  %3351 = vrcp.f32 %v1096_v22  ;;  %v1665_v4 = vmul.f32 %v1495_v38, %v1345_v20  ;;  %v1099_v51 = vadd.f32 1.0, %v3330_v60 }
 0x1a4   : > { %v3334_v63 = vpop.eup %3333  ;;  %3353 = vpow2.f32 %v2610_v9  ;;  %v1666_v33 = vmul.f32 %v1497_v8, %v1346_v29  ;;  %v1100_v28 = vadd.f32 1.0, %v3332_v12 }
 0x1a5   : > { %v1503_v49 = vpop.permute.xlu1 %1502  ;;  %v3336_v30 = vpop.eup %3335  ;;  %3355 = vpow2.f32 %v2611_v21  ;;  %v1347_v32 = vsub.f32 1.0, %v3334_v63  ;;  %v1729_v40 = vmax.f32 %v1665_v4, 0.0 }
 0x1a6   : > { %v1505_v48 = vpop.permute.xlu0 %1504  ;;  %2972 = vmatmul.mubr.msk.f32.gmra.mrb[16].mxu1 %vm1783_vm1, %v1725_v7  ;;  %v3338_v27 = vpop.eup %3337  ;;  %3357 = vrcp.f32 %v1097_v16  ;;  %v1348_v43 = vsub.f32 1.0, %v3336_v30  ;;  %v1730_v38 = vmax.f32 %v1666_v33, 0.0  ;;  %v2618_v7 = vmul.f32 -1.442695, %v3994_v11 }
 0x1a7   : > { %2974 = vmatprep.mubr.msk.f32.mxu1 %vm1783_vm1, %v1726_v36  ;;  %v3340_v59 = vpop.eup %3339  ;;  %3359 = vrcp.f32 %v1098_v24  ;;  %v1667_v25 = vmul.f32 %v1499_v18, %v1347_v32  ;;  %v1101_v17 = vadd.f32 1.0, %v3338_v27  ;;  %v2620_v30 = vmul.f32 -1.442695, %v4006_v37 }
 0x1a8   : > { %v3342_v47 = vpop.eup %3341  ;;  %3361 = vpow2.f32 %v2612_v35  ;;  %v1668_v8 = vmul.f32 %v1501_v13, %v1348_v43  ;;  %v1102_v15 = vadd.f32 1.0, %v3340_v59  ;;  %v2621_v27 = vmul.f32 -1.442695, %v4014_v52 }
 0x1a9   : > { %v1507_v50 = vpop.permute.xlu1 %1506  ;;  %v3344_v57 = vpop.eup %3343  ;;  %3363 = vpow2.f32 %v2613_v3  ;;  %v1349_v44 = vsub.f32 1.0, %v3342_v47  ;;  %v1731_v6 = vmax.f32 %v1667_v25, 0.0 }
 0x1aa   : > { %v1509_v31 = vpop.permute.xlu0 %1508  ;;  %2975 = vmatmul.mubr.msk.f32.gmra.mrb[18].mxu1 %vm1783_vm1, %v1727_v56  ;;  %v3346_v0 = vpop.eup %3345  ;;  %3365 = vrcp.f32 %v1099_v51  ;;  %v1350_v55 = vsub.f32 1.0, %v3344_v57  ;;  %v1732_v9 = vmax.f32 %v1668_v8, 0.0 }
 0x1ab   : > { %2977 = vmatprep.mubr.msk.f32.mxu1 %vm1783_vm1, %v1728_v5  ;;  %v3348_v54 = vpop.eup %3347  ;;  %3367 = vrcp.f32 %v1100_v28  ;;  %v1669_v22 = vmul.f32 %v1503_v49, %v1349_v44  ;;  %v1103_v18 = vadd.f32 1.0, %v3346_v0 }
 0x1ac   : > { %v3350_v1 = vpop.eup %3349  ;;  %3369 = vpow2.f32 %v2614_v14  ;;  %v1670_v19 = vmul.f32 %v1505_v48, %v1350_v55  ;;  %v1104_v46 = vadd.f32 1.0, %v3348_v54  ;;  %v4482_v55 = vld [vmem:[#allocation6_spill] sm:$0xff] }
 0x1ad   : > { %v1511_v41 = vpop.permute.xlu1 %1510  ;;  %v3352_v62 = vpop.eup %3351  ;;  %3371 = vpow2.f32 %v2615_v42  ;;  %v1351_v58 = vsub.f32 1.0, %v3350_v1  ;;  %v1733_v16 = vmax.f32 %v1669_v22, 0.0  ;;  %v4483_v22 = vld [vmem:[#allocation7_spill] sm:$0xff] }
 0x1ae   : > { %v1513_v53 = vpop.permute.xlu0 %1512  ;;  %2978 = vmatmul.mubr.msk.f32.gmra.mrb[20].mxu1 %vm1783_vm1, %v1729_v40  ;;  %v3354_v39 = vpop.eup %3353  ;;  %3373 = vrcp.f32 %v1101_v17  ;;  %v1352_v10 = vsub.f32 1.0, %v3352_v62  ;;  %v1734_v24 = vmax.f32 %v1670_v19, 0.0  ;;  %v4481_v40 = vld [vmem:[#allocation5_spill] sm:$0xff] }
 0x1af   : > { %2980 = vmatprep.mubr.msk.f32.mxu1 %vm1783_vm1, %v1730_v38  ;;  %v3356_v13 = vpop.eup %3355  ;;  %3375 = vrcp.f32 %v1102_v15  ;;  %v1671_v12 = vmul.f32 %v1507_v50, %v1351_v58  ;;  %v1105_v35 = vadd.f32 1.0, %v3354_v39  ;;  %v2622_v50 = vmul.f32 -1.442695, %v4018_v61 }
 0x1b0   : > { %v3358_v21 = vpop.eup %3357  ;;  %3377 = vpow2.f32 %v2616_v45  ;;  %v1672_v63 = vmul.f32 %v1509_v31, %v1352_v10  ;;  %v1106_v49 = vadd.f32 1.0, %v3356_v13  ;;  %v2623_v25 = vmul.f32 -1.442695, %v4481_v40 }
 0x1b1   : > { %v1515_v23 = vpop.permute.xlu1 %1514  ;;  %v3360_v36 = vpop.eup %3359  ;;  %3379 = vpow2.f32 %v2617_v2  ;;  %v1353_v11 = vsub.f32 1.0, %v3358_v21  ;;  %v1735_v5 = vmax.f32 %v1671_v12, 0.0  ;;  %v2625_v39 = vmul.f32 -1.442695, %v4483_v22 }
 0x1b2   : > { %v1517_v60 = vpop.permute.xlu0 %1516  ;;  %2981 = vmatmul.mubr.msk.f32.gmra.mrb[22].mxu1 %vm1783_vm1, %v1731_v6  ;;  %v3362_v20 = vpop.eup %3361  ;;  %3381 = vrcp.f32 %v1103_v18  ;;  %v1354_v34 = vsub.f32 1.0, %v3360_v36  ;;  %v1736_v59 = vmax.f32 %v1672_v63, 0.0 }
 0x1b3   : > { %2983 = vmatprep.mubr.msk.f32.mxu1 %vm1783_vm1, %v1732_v9  ;;  %v3364_v29 = vpop.eup %3363  ;;  %3383 = vrcp.f32 %v1104_v46  ;;  %v1673_v33 = vmul.f32 %v1511_v41, %v1353_v11  ;;  %v1107_v28 = vadd.f32 1.0, %v3362_v20  ;;  %v2624_v41 = vmul.f32 -1.442695, %v4482_v55 }
 0x1b4   : > { %v3366_v48 = vpop.eup %3365  ;;  %3385 = vpow2.f32 %v2618_v7  ;;  %v1674_v32 = vmul.f32 %v1513_v53, %v1354_v34  ;;  %v1108_v14 = vadd.f32 1.0, %v3364_v29 }
 0x1b5   : > { %v1519_v3 = vpop.permute.xlu1 %1518  ;;  %v3368_v4 = vpop.eup %3367  ;;  %3387 = vpow2.f32 %v2619_v26  ;;  %v1355_v37 = vsub.f32 1.0, %v3366_v48  ;;  %v1737_v0 = vmax.f32 %v1673_v33, 0.0 }
 0x1b6   : > { %v1521_v56 = vpop.permute.xlu0 %1520  ;;  %2984 = vmatmul.mubr.msk.f32.gmra.mrb[24].mxu1 %vm1783_vm1, %v1733_v16  ;;  %v3370_v51 = vpop.eup %3369  ;;  %3389 = vrcp.f32 %v1105_v35  ;;  %v1356_v52 = vsub.f32 1.0, %v3368_v4  ;;  %v1738_v17 = vmax.f32 %v1674_v32, 0.0 }
 0x1b7   : > { %2986 = vmatprep.mubr.msk.f32.mxu1 %vm1783_vm1, %v1734_v24  ;;  %v3372_v47 = vpop.eup %3371  ;;  %3391 = vrcp.f32 %v1106_v49  ;;  %v1675_v38 = vmul.f32 %v1515_v23, %v1355_v37  ;;  %v1109_v44 = vadd.f32 1.0, %v3370_v51  ;;  %v4485_v24 = vld [vmem:[#allocation9_spill] sm:$0xff] }
 0x1b8   : > { %v3374_v43 = vpop.eup %3373  ;;  %3393 = vpow2.f32 %v2620_v30  ;;  %v1676_v54 = vmul.f32 %v1517_v60, %v1356_v52  ;;  %v1110_v1 = vadd.f32 1.0, %v3372_v47  ;;  %v4484_v60 = vld [vmem:[#allocation8_spill] sm:$0xff]  ;;  %v2627_v63 = vmul.f32 -1.442695, %v4485_v24 }
 0x1b9   : > { %v1523_v31 = vpop.permute.xlu1 %1522  ;;  %v3376_v42 = vpop.eup %3375  ;;  %3395 = vpow2.f32 %v2621_v27  ;;  %v1357_v61 = vsub.f32 1.0, %v3374_v43  ;;  %v1739_v9 = vmax.f32 %v1675_v38, 0.0  ;;  %v2626_v36 = vmul.f32 -1.442695, %v4484_v60  ;;  %v4486_v27 = vld [vmem:[#allocation10_spill] sm:$0xff] }
 0x1ba   : > { %v1525_v57 = vpop.permute.xlu0 %1524  ;;  %2987 = vmatmul.mubr.msk.f32.gmra.mrb[26].mxu1 %vm1783_vm1, %v1735_v5  ;;  %v3378_v8 = vpop.eup %3377  ;;  %3397 = vrcp.f32 %v1107_v28  ;;  %v1358_v53 = vsub.f32 1.0, %v3376_v42  ;;  %v1740_v13 = vmax.f32 %v1676_v54, 0.0  ;;  %v2628_v5 = vmul.f32 -1.442695, %v4486_v27  ;;  %v4487_v28 = vld [vmem:[#allocation11_spill] sm:$0xff] }
 0x1bb   : > { %2989 = vmatprep.mubr.msk.f32.mxu1 %vm1783_vm1, %v1736_v59  ;;  %v3380_v15 = vpop.eup %3379  ;;  %3399 = vrcp.f32 %v1108_v14  ;;  %v1677_v19 = vmul.f32 %v1519_v3, %v1357_v61  ;;  %v1111_v46 = vadd.f32 1.0, %v3378_v8  ;;  %v2629_v47 = vmul.f32 -1.442695, %v4487_v28 }
 0x1bc   : > { %v3382_v45 = vpop.eup %3381  ;;  %3401 = vpow2.f32 %v2622_v50  ;;  %v1678_v58 = vmul.f32 %v1521_v56, %v1358_v53  ;;  %v1112_v10 = vadd.f32 1.0, %v3380_v15  ;;  %v4489_v15 = vld [vmem:[#allocation13_spill] sm:$0xff] }
 0x1bd   : > { %v1527_v62 = vpop.permute.xlu1 %1526  ;;  %v3384_v6 = vpop.eup %3383  ;;  %3403 = vpow2.f32 %v2623_v25  ;;  %v1359_v7 = vsub.f32 1.0, %v3382_v45  ;;  %v1741_v35 = vmax.f32 %v1677_v19, 0.0  ;;  %v2631_v61 = vmul.f32 -1.442695, %v4489_v15 }
 0x1be   : > { %v1529_v2 = vpop.permute.xlu0 %1528  ;;  %2990 = vmatmul.mubr.msk.f32.gmra.mrb[28].mxu1 %vm1783_vm1, %v1737_v0  ;;  %v3386_v18 = vpop.eup %3385  ;;  %3405 = vrcp.f32 %v1109_v44  ;;  %v1360_v26 = vsub.f32 1.0, %v3384_v6  ;;  %v1742_v49 = vmax.f32 %v1678_v58, 0.0  ;;  %v4488_v0 = vld [vmem:[#allocation12_spill] sm:$0xff] }
 0x1bf   : > { %2992 = vmatprep.mubr.msk.f32.mxu1 %vm1783_vm1, %v1738_v17  ;;  %v3388_v21 = vpop.eup %3387  ;;  %3407 = vrcp.f32 %v1110_v1  ;;  %v1679_v29 = vmul.f32 %v1523_v31, %v1359_v7  ;;  %v1113_v30 = vadd.f32 1.0, %v3386_v18  ;;  %v2630_v38 = vmul.f32 -1.442695, %v4488_v0 }
 0x1c0   : > { %v3390_v23 = vpop.eup %3389  ;;  %3409 = vpow2.f32 %v2624_v41  ;;  %v1680_v48 = vmul.f32 %v1525_v57, %v1360_v26  ;;  %v1114_v56 = vadd.f32 1.0, %v3388_v21  ;;  %v4491_v21 = vld [vmem:[#allocation15_spill] sm:$0xff] }
 0x1c1   : > { %v1531_v16 = vpop.permute.xlu1 %1530  ;;  %v3392_v20 = vpop.eup %3391  ;;  %3411 = vpow2.f32 %v2625_v39  ;;  %v1361_v3 = vsub.f32 1.0, %v3390_v23  ;;  %v1743_v37 = vmax.f32 %v1679_v29, 0.0  ;;  %v2633_v7 = vmul.f32 -1.442695, %v4491_v21 }
 0x1c2   : > { %v1533_v12 = vpop.permute.xlu0 %1532  ;;  %2993 = vmatmul.mubr.msk.f32.gmra.mrb[30].mxu1 %vm1783_vm1, %v1739_v9  ;;  %v3394_v11 = vpop.eup %3393  ;;  %3413 = vrcp.f32 %v1111_v46  ;;  %v1362_v33 = vsub.f32 1.0, %v3392_v20  ;;  %v1744_v50 = vmax.f32 %v1680_v48, 0.0  ;;  %v4490_v9 = vld [vmem:[#allocation14_spill] sm:$0xff] }
 0x1c3   : > { %2995 = vmatprep.mubr.msk.f32.mxu1 %vm1783_vm1, %v1740_v13  ;;  %v3396_v34 = vpop.eup %3395  ;;  %3415 = vrcp.f32 %v1112_v10  ;;  %v1681_v14 = vmul.f32 %v1527_v62, %v1361_v3  ;;  %v1115_v31 = vadd.f32 1.0, %v3394_v11  ;;  %v2632_v19 = vmul.f32 -1.442695, %v4490_v9 }
 0x1c4   : > { %v3398_v4 = vpop.eup %3397  ;;  %3417 = vpow2.f32 %v2626_v36  ;;  %v1682_v52 = vmul.f32 %v1529_v2, %v1362_v33  ;;  %v1116_v40 = vadd.f32 1.0, %v3396_v34  ;;  %v4493_v34 = vld [vmem:[#allocation18_spill] sm:$0xff] }
 0x1c5   : > { %v1535_v51 = vpop.permute.xlu1 %1534  ;;  %v3400_v32 = vpop.eup %3399  ;;  %3419 = vpow2.f32 %v2627_v63  ;;  %v1363_v42 = vsub.f32 1.0, %v3398_v4  ;;  %v1745_v1 = vmax.f32 %v1681_v14, 0.0  ;;  %v2635_v3 = vmul.f32 -1.442695, %v4493_v34 }
 0x1c6   : > { %v1537_v59 = vpop.permute.xlu0 %1536  ;;  %2996 = vmatmul.mubr.msk.f32.gmra.mrb[32].mxu1 %vm1783_vm1, %v1741_v35  ;;  %v3402_v43 = vpop.eup %3401  ;;  %3421 = vrcp.f32 %v1113_v30  ;;  %v1364_v8 = vsub.f32 1.0, %v3400_v32  ;;  %v1746_v41 = vmax.f32 %v1682_v52, 0.0  ;;  %v4492_v35 = vld [vmem:[#allocation16_spill] sm:$0xff]  ;;  %v4494_v52 = vld [vmem:[#allocation17_spill] sm:$0xff] }
 0x1c7   : > { %2998 = vmatprep.mubr.msk.f32.mxu1 %vm1783_vm1, %v1742_v49  ;;  %v3404_v57 = vpop.eup %3403  ;;  %3423 = vrcp.f32 %v1114_v56  ;;  %v1683_v45 = vmul.f32 %v1531_v16, %v1363_v42  ;;  %v1117_v62 = vadd.f32 1.0, %v3402_v43  ;;  %v2634_v29 = vmul.f32 -1.442695, %v4492_v35 }
 0x1c8   : > { %v3406_v25 = vpop.eup %3405  ;;  %3425 = vpow2.f32 %v2628_v5  ;;  %v1684_v53 = vmul.f32 %v1533_v12, %v1364_v8  ;;  %v1118_v22 = vadd.f32 1.0, %v3404_v57 }
 0x1c9   : > { %v1539_v17 = vpop.permute.xlu1 %1538  ;;  %v3408_v44 = vpop.eup %3407  ;;  %3427 = vpow2.f32 %v2629_v47  ;;  %v1365_v6 = vsub.f32 1.0, %v3406_v25  ;;  %v1747_v10 = vmax.f32 %v1683_v45, 0.0 }
 0x1ca   : > { %v1541_v54 = vpop.permute.xlu0 %1540  ;;  %2999 = vmatmul.mubr.msk.f32.gmra.mrb[34].mxu1 %vm1783_vm1, %v1743_v37  ;;  %v3410_v55 = vpop.eup %3409  ;;  %3429 = vrcp.f32 %v1115_v31  ;;  %v1366_v18 = vsub.f32 1.0, %v3408_v44  ;;  %v1748_v36 = vmax.f32 %v1684_v53, 0.0  ;;  %v2636_v31 = vmul.f32 -1.442695, %v4494_v52 }
 0x1cb   : > { %3001 = vmatprep.mubr.msk.f32.mxu1 %vm1783_vm1, %v1744_v50  ;;  %v3412_v2 = vpop.eup %3411  ;;  %3431 = vrcp.f32 %v1116_v40  ;;  %v1685_v23 = vmul.f32 %v1535_v51, %v1365_v6  ;;  %v1119_v16 = vadd.f32 1.0, %v3410_v55 }
 0x1cc   : > { %v3414_v39 = vpop.eup %3413  ;;  %3433 = vpow2.f32 %v2630_v38  ;;  %v1686_v26 = vmul.f32 %v1537_v59, %v1366_v18  ;;  %v1120_v24 = vadd.f32 1.0, %v3412_v2 }
 0x1cd   : > { %v1543_v13 = vpop.permute.xlu1 %1542  ;;  %v3416_v46 = vpop.eup %3415  ;;  %3435 = vpow2.f32 %v2631_v61  ;;  %v1367_v20 = vsub.f32 1.0, %v3414_v39  ;;  %v1749_v56 = vmax.f32 %v1685_v23, 0.0 }
 0x1ce   : > { %v1545_v58 = vpop.permute.xlu0 %1544  ;;  %3002 = vmatmul.mubr.msk.f32.gmra.mrb[36].mxu1 %vm1783_vm1, %v1745_v1  ;;  %v3418_v60 = vpop.eup %3417  ;;  %3437 = vrcp.f32 %v1117_v62  ;;  %v1368_v11 = vsub.f32 1.0, %v3416_v46  ;;  %v1750_v5 = vmax.f32 %v1686_v26, 0.0 }
 0x1cf   : > { %3004 = vmatprep.mubr.msk.f32.mxu1 %vm1783_vm1, %v1746_v41  ;;  %v3420_v12 = vpop.eup %3419  ;;  %3439 = vrcp.f32 %v1118_v22  ;;  %v1687_v4 = vmul.f32 %v1539_v17, %v1367_v20  ;;  %v1121_v51 = vadd.f32 1.0, %v3418_v60 }
 0x1d0   : > { %v3422_v63 = vpop.eup %3421  ;;  %3441 = vpow2.f32 %v2632_v19  ;;  %v1688_v33 = vmul.f32 %v1541_v54, %v1368_v11  ;;  %v1122_v28 = vadd.f32 1.0, %v3420_v12 }
 0x1d1   : > { %v1547_v49 = vpop.permute.xlu1 %1546  ;;  %v3424_v30 = vpop.eup %3423  ;;  %3443 = vpow2.f32 %v2633_v7  ;;  %v1369_v32 = vsub.f32 1.0, %v3422_v63  ;;  %v1751_v57 = vmax.f32 %v1687_v4, 0.0 }
 0x1d2   : > { %v1549_v48 = vpop.permute.xlu0 %1548  ;;  %3005 = vmatmul.mubr.msk.f32.gmra.mrb[38].mxu1 %vm1783_vm1, %v1747_v10  ;;  %v3426_v27 = vpop.eup %3425  ;;  %3445 = vrcp.f32 %v1119_v16  ;;  %v1370_v37 = vsub.f32 1.0, %v3424_v30  ;;  %v1752_v25 = vmax.f32 %v1688_v33, 0.0 }
 0x1d3   : > { %3007 = vmatprep.mubr.msk.f32.mxu1 %vm1783_vm1, %v1748_v36  ;;  %v3428_v59 = vpop.eup %3427  ;;  %3447 = vrcp.f32 %v1120_v24  ;;  %v1689_v42 = vmul.f32 %v1543_v13, %v1369_v32  ;;  %v1123_v38 = vadd.f32 1.0, %v3426_v27 }
 0x1d4   : > { %v3430_v47 = vpop.eup %3429  ;;  %3449 = vpow2.f32 %v2634_v29  ;;  %v1690_v0 = vmul.f32 %v1545_v58, %v1370_v37  ;;  %v1124_v54 = vadd.f32 1.0, %v3428_v59 }
 0x1d5   : > { %v1551_v14 = vpop.permute.xlu1 %1550  ;;  %v3432_v50 = vpop.eup %3431  ;;  %3451 = vpow2.f32 %v2635_v3  ;;  %v1371_v17 = vsub.f32 1.0, %v3430_v47  ;;  %v1753_v55 = vmax.f32 %v1689_v42, 0.0 }
 0x1d6   : > { %v1553_v43 = vpop.permute.xlu0 %1552  ;;  %3008 = vmatmul.mubr.msk.f32.gmra.mrb[40].mxu1 %vm1783_vm1, %v1749_v56  ;;  %v3434_v40 = vpop.eup %3433  ;;  %3453 = vrcp.f32 %v1121_v51  ;;  %v1372_v15 = vsub.f32 1.0, %v3432_v50  ;;  %v1754_v62 = vmax.f32 %v1690_v0, 0.0 }
 0x1d7   : > { %3010 = vmatprep.mubr.msk.f32.mxu1 %vm1783_vm1, %v1750_v5  ;;  %v3436_v8 = vpop.eup %3435  ;;  %3455 = vrcp.f32 %v1122_v28  ;;  %v1691_v41 = vmul.f32 %v1547_v49, %v1371_v17  ;;  %v1125_v6 = vadd.f32 1.0, %v3434_v40 }
 0x1d8   : > { %v3438_v44 = vpop.eup %3437  ;;  %3457 = vpow2.f32 %v2636_v31  ;;  %v1692_v2 = vmul.f32 %v1549_v48, %v1372_v15  ;;  %v1126_v9 = vadd.f32 1.0, %v3436_v8 }
 0x1d9   : > { %v1555_v61 = vpop.permute.xlu1 %1554  ;;  %v3440_v45 = vpop.eup %3439  ;;  %3459 = vrcp.f32 %v1123_v38  ;;  %v1373_v39 = vsub.f32 1.0, %v3438_v44  ;;  %v1755_v21 = vmax.f32 %v1691_v41, 0.0 }
 0x1da   : > { %v1557_v1 = vpop.permute.xlu0 %1556  ;;  %3011 = vmatmul.mubr.msk.f32.gmra.mrb[42].mxu1 %vm1783_vm1, %v1751_v57  ;;  %v3442_v53 = vpop.eup %3441  ;;  %3461 = vrcp.f32 %v1124_v54  ;;  %v1374_v18 = vsub.f32 1.0, %v3440_v45  ;;  %v1756_v23 = vmax.f32 %v1692_v2, 0.0 }
 0x1db   : > { %3013 = vmatprep.mubr.msk.f32.mxu1 %vm1783_vm1, %v1752_v25  ;;  %v3444_v22 = vpop.eup %3443  ;;  %v1693_v7 = vmul.f32 %v1551_v14, %v1373_v39  ;;  %3463 = vrcp.f32 %v1125_v6  ;;  %v1127_v36 = vadd.f32 1.0, %v3442_v53 }
 0x1dc   : > { %v3446_v19 = vpop.eup %3445  ;;  %v1694_v60 = vmul.f32 %v1553_v43, %v1374_v18  ;;  %3465 = vrcp.f32 %v1126_v9  ;;  %v1128_v12 = vadd.f32 1.0, %v3444_v22 }
 0x1dd   : > { %v1559_v13 = vpop.permute.xlu1 %1558  ;;  %v3448_v46 = vpop.eup %3447  ;;  %v1375_v16 = vsub.f32 1.0, %v3446_v19  ;;  %v1757_v29 = vmax.f32 %v1693_v7, 0.0  ;;  %3467 = vrcp.f32 %v1127_v36 }
 0x1de   : > { %v1561_v58 = vpop.permute.xlu0 %1560  ;;  %3014 = vmatmul.mubr.msk.f32.gmra.mrb[44].mxu1 %vm1783_vm1, %v1753_v55  ;;  %v3450_v10 = vpop.eup %3449  ;;  %v1376_v24 = vsub.f32 1.0, %v3448_v46  ;;  %v1758_v48 = vmax.f32 %v1694_v60, 0.0  ;;  %3469 = vrcp.f32 %v1128_v12 }
 0x1df   : > { %3016 = vmatprep.mubr.msk.f32.mxu1 %vm1783_vm1, %v1754_v62  ;;  %v3452_v26 = vpop.eup %3451  ;;  %v1695_v11 = vmul.f32 %v1555_v61, %v1375_v16  ;;  %v1129_v34 = vadd.f32 1.0, %v3450_v10 }
 0x1e0   : > { %v3454_v20 = vpop.eup %3453  ;;  %v1696_v30 = vmul.f32 %v1557_v1, %v1376_v24  ;;  %v1130_v4 = vadd.f32 1.0, %v3452_v26 }
 0x1e1   : > { %v1563_v63 = vpop.permute.xlu1 %1562  ;;  %v3456_v35 = vpop.eup %3455  ;;  %v1377_v56 = vsub.f32 1.0, %v3454_v20  ;;  %v1759_v59 = vmax.f32 %v1695_v11, 0.0  ;;  %3471 = vrcp.f32 %v1129_v34  ;;  %v4261_v20 = vld [vmem:[%s4449_s4] ss:$0 sm:$0xff] }
 0x1e2   : > { %3017 = vmatmul.mubr.msk.f32.gmra.mrb[46].mxu1 %vm1783_vm1, %v1755_v21  ;;  %v1565_v49 = vpop.permute.xlu0 %1564  ;;  %v3458_v3 = vpop.eup %3457  ;;  %v1378_v5 = vsub.f32 1.0, %v3456_v35  ;;  %v1760_v28 = vmax.f32 %v1696_v30, 0.0  ;;  %3473 = vrcp.f32 %v1130_v4 }
 0x1e3   : > { %3019 = vmatprep.mubr.msk.f32.mxu1 %vm1783_vm1, %v1756_v23  ;;  %v3460_v27 = vpop.eup %3459  ;;  %v1697_v32 = vmul.f32 %v1559_v13, %v1377_v56  ;;  %v1131_v37 = vadd.f32 1.0, %v3458_v3 }
 0x1e4   : > { %v3462_v51 = vpop.eup %3461  ;;  %v1698_v47 = vmul.f32 %v1561_v58, %v1378_v5  ;;  %v1379_v14 = vsub.f32 1.0, %v3460_v27 }
 0x1e5   : > { %v1567_v33 = vpop.permute.xlu1 %1566  ;;  %v3464_v50 = vpop.eup %3463  ;;  %v1380_v52 = vsub.f32 1.0, %v3462_v51  ;;  %v1761_v57 = vmax.f32 %v1697_v32, 0.0  ;;  %3475 = vrcp.f32 %v1131_v37 }
 0x1e6   : > { %3020 = vmatmul.mubr.msk.f32.gmra.mrb[48].mxu1 %vm1783_vm1, %v1757_v29  ;;  %v1569_v43 = vpop.permute.xlu0 %1568  ;;  %v3466_v31 = vpop.eup %3465  ;;  %v1699_v42 = vmul.f32 %v1563_v63, %v1379_v14  ;;  %v1762_v40 = vmax.f32 %v1698_v47, 0.0  ;;  %v1381_v38 = vsub.f32 1.0, %v3464_v50 }
 0x1e7   : > { %3022 = vmatprep.mubr.msk.f32.mxu1 %vm1783_vm1, %v1758_v48  ;;  %v1700_v25 = vmul.f32 %v1565_v49, %v1380_v52  ;;  %v3468_v8 = vpop.eup %3467  ;;  %v1382_v17 = vsub.f32 1.0, %v3466_v31 }
 0x1e8   : > { %v3470_v54 = vpop.eup %3469  ;;  %v1763_v44 = vmax.f32 %v1699_v42, 0.0  ;;  %v1701_v15 = vmul.f32 %v1567_v33, %v1381_v38  ;;  %v1383_v55 = vsub.f32 1.0, %v3468_v8 }
 0x1e9   : > { %v1571_v0 = vpop.permute.xlu1 %1570  ;;  %v1764_v1 = vmax.f32 %v1700_v25, 0.0  ;;  %v1702_v45 = vmul.f32 %v1569_v43, %v1382_v17  ;;  %v1384_v53 = vsub.f32 1.0, %v3470_v54 }
 0x1ea   : > { %3023 = vmatmul.mubr.msk.f32.gmra.mrb[50].mxu1 %vm1783_vm1, %v1759_v59  ;;  %v1573_v61 = vpop.permute.xlu0 %1572  ;;  %v1765_v6 = vmax.f32 %v1701_v15, 0.0  ;;  %v1703_v22 = vmul.f32 %v1571_v0, %v1383_v55 }
 0x1eb   : > { %3025 = vmatprep.mubr.msk.f32.mxu1 %vm1783_vm1, %v1760_v28  ;;  %v3472_v41 = vpop.eup %3471  ;;  %v1766_v39 = vmax.f32 %v1702_v45, 0.0  ;;  %v1704_v9 = vmul.f32 %v1573_v61, %v1384_v53 }
 0x1ec   : > { %v3474_v2 = vpop.eup %3473  ;;  %v1385_v19 = vsub.f32 1.0, %v3472_v41  ;;  %v1767_v46 = vmax.f32 %v1703_v22, 0.0 }
 0x1ed   : > { %v1575_v62 = vpop.permute.xlu1 %1574  ;;  %v1386_v58 = vsub.f32 1.0, %v3474_v2  ;;  %v1768_v7 = vmax.f32 %v1704_v9, 0.0 }
 0x1ee   : > { %3026 = vmatmul.mubr.msk.f32.gmra.mrb[52].mxu1 %vm1783_vm1, %v1761_v57  ;;  %v1577_v18 = vpop.permute.xlu0 %1576  ;;  %v1705_v21 = vmul.f32 %v1575_v62, %v1385_v19 }
 0x1ef   : > { %3028 = vmatprep.mubr.msk.f32.mxu1 %vm1783_vm1, %v1762_v40  ;;  %v3476_v13 = vpop.eup %3475  ;;  %v1706_v10 = vmul.f32 %v1577_v18, %v1386_v58 }
 0x1f0   : > { %v1387_v60 = vsub.f32 1.0, %v3476_v13  ;;  %v1769_v36 = vmax.f32 %v1705_v21, 0.0 }
 0x1f1   : > { %v1579_v23 = vpop.permute.xlu1 %1578  ;;  %v1770_v16 = vmax.f32 %v1706_v10, 0.0 }
 0x1f2   : > { %3029 = vmatmul.mubr.msk.f32.gmra.mrb[54].mxu1 %vm1783_vm1, %v1763_v44  ;;  %v1707_v26 = vmul.f32 %v1579_v23, %v1387_v60 }
 0x1f3   : > { %3031 = vmatprep.mubr.msk.f32.mxu1 %vm1783_vm1, %v1764_v1 }
 0x1f4   : > { %v1771_v12 = vmax.f32 %v1707_v26, 0.0 }
 0x1f6   : > { %3032 = vmatmul.mubr.msk.f32.gmra.mrb[56].mxu1 %vm1783_vm1, %v1765_v6 }
 0x1f7   : > { %3034 = vmatprep.mubr.msk.f32.mxu1 %vm1783_vm1, %v1766_v39 }
 0x1fa   : > { %3035 = vmatmul.mubr.msk.f32.gmra.mrb[58].mxu1 %vm1783_vm1, %v1767_v46 }
 0x1fb   : > { %3037 = vmatprep.mubr.msk.f32.mxu1 %vm1783_vm1, %v1768_v7 }
 0x1fe   : > { %3038 = vmatmul.mubr.msk.f32.gmra.mrb[60].mxu1 %vm1783_vm1, %v1769_v36 }
 0x1ff   : > { %3040 = vmatprep.mubr.msk.f32.mxu1 %vm1783_vm1, %v1770_v16 }
 0x202   : > { %3041 = vmatmul.mubr.msk.f32.gmra.mrb[62].mxu1 %vm1783_vm1, %v1771_v12 }
 0x259   : > { %v2949_v24 = vpop.f32.mrb[0].mxu1 }
 0x25a   : > { %v2048_v63 = vadd.f32 %v2949_v24, %v4261_v20  ;;  %v2042_v35 = vpop.f32.mrb[1].mxu1 }
 0x25b   : > { %v2043_v29 = vadd.f32 %v4261_v20, %v2042_v35 }
 0x25c   : > { %2362 = vst [vmem:[%s4265_s11 + $0x8] sm:$0xff] %v2048_v63 }
 0x25d   : > { %2361 = vst [vmem:[%s4265_s11] sm:$0xff] %v2043_v29  ;;  %v2952_v11 = vpop.f32.mrb[2].mxu1 }
 0x25e   : > { %v2058_v49 = vadd.f32 %v2952_v11, %v4261_v20  ;;  %v2052_v48 = vpop.f32.mrb[3].mxu1 }
 0x25f   : > { %v2053_v30 = vadd.f32 %v4261_v20, %v2052_v48 }
 0x260   : > { %2364 = vst [vmem:[%s4265_s11 + $0x18] sm:$0xff] %v2058_v49 }
 0x261   : > { %2363 = vst [vmem:[%s4265_s11 + $0x10] sm:$0xff] %v2053_v30  ;;  %v2955_v34 = vpop.f32.mrb[4].mxu1 }
 0x262   : > { %v2068_v3 = vadd.f32 %v2955_v34, %v4261_v20  ;;  %v2062_v56 = vpop.f32.mrb[5].mxu1 }
 0x263   : > { %v2063_v4 = vadd.f32 %v4261_v20, %v2062_v56 }
 0x264   : > { %2366 = vst [vmem:[%s4265_s11 + $0x28] sm:$0xff] %v2068_v3 }
 0x265   : > { %2365 = vst [vmem:[%s4265_s11 + $0x20] sm:$0xff] %v2063_v4  ;;  %v2958_v27 = vpop.f32.mrb[6].mxu1 }
 0x266   : > { %v2078_v5 = vadd.f32 %v2958_v27, %v4261_v20  ;;  %v2072_v33 = vpop.f32.mrb[7].mxu1 }
 0x267   : > { %v2073_v51 = vadd.f32 %v4261_v20, %v2072_v33 }
 0x268   : > { %2368 = vst [vmem:[%s4265_s11 + $0x38] sm:$0xff] %v2078_v5 }
 0x269   : > { %2367 = vst [vmem:[%s4265_s11 + $0x30] sm:$0xff] %v2073_v51  ;;  %v2961_v59 = vpop.f32.mrb[8].mxu1 }
 0x26a   : > { %v2088_v32 = vadd.f32 %v2961_v59, %v4261_v20  ;;  %v2082_v28 = vpop.f32.mrb[9].mxu1 }
 0x26b   : > { %v2083_v47 = vadd.f32 %v4261_v20, %v2082_v28 }
 0x26c   : > { %2370 = vst [vmem:[%s4265_s11 + $0x48] sm:$0xff] %v2088_v32 }
 0x26d   : > { %2369 = vst [vmem:[%s4265_s11 + $0x40] sm:$0xff] %v2083_v47  ;;  %v2964_v37 = vpop.f32.mrb[10].mxu1 }
 0x26e   : > { %v2098_v14 = vadd.f32 %v2964_v37, %v4261_v20  ;;  %v2092_v43 = vpop.f32.mrb[11].mxu1 }
 0x26f   : > { %v2093_v50 = vadd.f32 %v4261_v20, %v2092_v43 }
 0x270   : > { %2372 = vst [vmem:[%s4265_s11 + $0x58] sm:$0xff] %v2098_v14 }
 0x271   : > { %2371 = vst [vmem:[%s4265_s11 + $0x50] sm:$0xff] %v2093_v50  ;;  %v2967_v52 = vpop.f32.mrb[12].mxu1 }
 0x272   : > { %v2108_v31 = vadd.f32 %v2967_v52, %v4261_v20  ;;  %v2102_v57 = vpop.f32.mrb[13].mxu1 }
 0x273   : > { %v2103_v42 = vadd.f32 %v4261_v20, %v2102_v57 }
 0x274   : > { %2374 = vst [vmem:[%s4265_s11 + $0x68] sm:$0xff] %v2108_v31 }
 0x275   : > { %2373 = vst [vmem:[%s4265_s11 + $0x60] sm:$0xff] %v2103_v42  ;;  %v2970_v40 = vpop.f32.mrb[14].mxu1 }
 0x276   : > { %v2118_v25 = vadd.f32 %v2970_v40, %v4261_v20  ;;  %v2112_v0 = vpop.f32.mrb[15].mxu1 }
 0x277   : > { %v2113_v38 = vadd.f32 %v4261_v20, %v2112_v0 }
 0x278   : > { %2376 = vst [vmem:[%s4265_s11 + $0x78] sm:$0xff] %v2118_v25 }
 0x279   : > { %2375 = vst [vmem:[%s4265_s11 + $0x70] sm:$0xff] %v2113_v38  ;;  %v2973_v8 = vpop.f32.mrb[16].mxu1 }
 0x27a   : > { %v2128_v17 = vadd.f32 %v2973_v8, %v4261_v20  ;;  %v2122_v54 = vpop.f32.mrb[17].mxu1 }
 0x27b   : > { %v2123_v44 = vadd.f32 %v4261_v20, %v2122_v54 }
 0x27c   : > { %2378 = vst [vmem:[%s4265_s11 + $0x88] sm:$0xff] %v2128_v17 }
 0x27d   : > { %2377 = vst [vmem:[%s4265_s11 + $0x80] sm:$0xff] %v2123_v44  ;;  %v2976_v15 = vpop.f32.mrb[18].mxu1 }
 0x27e   : > { %v2138_v61 = vadd.f32 %v2976_v15, %v4261_v20  ;;  %v2132_v1 = vpop.f32.mrb[19].mxu1 }
 0x27f   : > { %v2133_v45 = vadd.f32 %v4261_v20, %v2132_v1 }
 0x280   : > { %2380 = vst [vmem:[%s4265_s11 + $0x98] sm:$0xff] %v2138_v61 }
 0x281   : > { %2379 = vst [vmem:[%s4265_s11 + $0x90] sm:$0xff] %v2133_v45  ;;  %v2979_v55 = vpop.f32.mrb[20].mxu1 }
 0x282   : > { %v2148_v41 = vadd.f32 %v2979_v55, %v4261_v20  ;;  %v2142_v53 = vpop.f32.mrb[21].mxu1 }
 0x283   : > { %v2143_v62 = vadd.f32 %v4261_v20, %v2142_v53 }
 0x284   : > { %2382 = vst [vmem:[%s4265_s11 + $0xa8] sm:$0xff] %v2148_v41 }
 0x285   : > { %2381 = vst [vmem:[%s4265_s11 + $0xa0] sm:$0xff] %v2143_v62  ;;  %v2982_v2 = vpop.f32.mrb[22].mxu1 }
 0x286   : > { %v2158_v6 = vadd.f32 %v2982_v2, %v4261_v20  ;;  %v2152_v22 = vpop.f32.mrb[23].mxu1 }
 0x287   : > { %v2153_v39 = vadd.f32 %v4261_v20, %v2152_v22 }
 0x288   : > { %2384 = vst [vmem:[%s4265_s11 + $0xb8] sm:$0xff] %v2158_v6 }
 0x289   : > { %2383 = vst [vmem:[%s4265_s11 + $0xb0] sm:$0xff] %v2153_v39  ;;  %v2985_v9 = vpop.f32.mrb[24].mxu1 }
 0x28a   : > { %v2168_v19 = vadd.f32 %v2985_v9, %v4261_v20  ;;  %v2162_v18 = vpop.f32.mrb[25].mxu1 }
 0x28b   : > { %v2163_v13 = vadd.f32 %v4261_v20, %v2162_v18 }
 0x28c   : > { %2386 = vst [vmem:[%s4265_s11 + $0xc8] sm:$0xff] %v2168_v19 }
 0x28d   : > { %2385 = vst [vmem:[%s4265_s11 + $0xc0] sm:$0xff] %v2163_v13  ;;  %v2988_v58 = vpop.f32.mrb[26].mxu1 }
 0x28e   : > { %v2178_v46 = vadd.f32 %v2988_v58, %v4261_v20  ;;  %v2172_v21 = vpop.f32.mrb[27].mxu1 }
 0x28f   : > { %v2173_v7 = vadd.f32 %v4261_v20, %v2172_v21 }
 0x290   : > { %2388 = vst [vmem:[%s4265_s11 + $0xd8] sm:$0xff] %v2178_v46 }
 0x291   : > { %2387 = vst [vmem:[%s4265_s11 + $0xd0] sm:$0xff] %v2173_v7  ;;  %v2991_v10 = vpop.f32.mrb[28].mxu1 }
 0x292   : > { %v2188_v23 = vadd.f32 %v2991_v10, %v4261_v20  ;;  %v2182_v60 = vpop.f32.mrb[29].mxu1 }
 0x293   : > { %v2183_v36 = vadd.f32 %v4261_v20, %v2182_v60 }
 0x294   : > { %2390 = vst [vmem:[%s4265_s11 + $0xe8] sm:$0xff] %v2188_v23 }
 0x295   : > { %2389 = vst [vmem:[%s4265_s11 + $0xe0] sm:$0xff] %v2183_v36  ;;  %v2994_v26 = vpop.f32.mrb[30].mxu1 }
 0x296   : > { %v2198_v16 = vadd.f32 %v2994_v26, %v4261_v20  ;;  %v2192_v12 = vpop.f32.mrb[31].mxu1 }
 0x297   : > { %v2193_v24 = vadd.f32 %v4261_v20, %v2192_v12 }
 0x298   : > { %2392 = vst [vmem:[%s4265_s11 + $0xf8] sm:$0xff] %v2198_v16 }
 0x299   : > { %2391 = vst [vmem:[%s4265_s11 + $0xf0] sm:$0xff] %v2193_v24  ;;  %v2997_v63 = vpop.f32.mrb[32].mxu1 }
 0x29a   : > { %v2208_v35 = vadd.f32 %v2997_v63, %v4261_v20  ;;  %v2202_v29 = vpop.f32.mrb[33].mxu1 }
 0x29b   : > { %v2203_v11 = vadd.f32 %v4261_v20, %v2202_v29 }
 0x29c   : > { %2394 = vst [vmem:[%s4265_s11 + $0x108] sm:$0xff] %v2208_v35 }
 0x29d   : > { %2393 = vst [vmem:[%s4265_s11 + $0x100] sm:$0xff] %v2203_v11  ;;  %v3000_v49 = vpop.f32.mrb[34].mxu1 }
 0x29e   : > { %v2218_v48 = vadd.f32 %v3000_v49, %v4261_v20  ;;  %v2212_v30 = vpop.f32.mrb[35].mxu1 }
 0x29f   : > { %v2213_v34 = vadd.f32 %v4261_v20, %v2212_v30 }
 0x2a0   : > { %2396 = vst [vmem:[%s4265_s11 + $0x118] sm:$0xff] %v2218_v48 }
 0x2a1   : > { %2395 = vst [vmem:[%s4265_s11 + $0x110] sm:$0xff] %v2213_v34  ;;  %v3003_v3 = vpop.f32.mrb[36].mxu1 }
 0x2a2   : > { %v2228_v56 = vadd.f32 %v3003_v3, %v4261_v20  ;;  %v2222_v4 = vpop.f32.mrb[37].mxu1 }
 0x2a3   : > { %v2223_v27 = vadd.f32 %v4261_v20, %v2222_v4 }
 0x2a4   : > { %2398 = vst [vmem:[%s4265_s11 + $0x128] sm:$0xff] %v2228_v56 }
 0x2a5   : > { %2397 = vst [vmem:[%s4265_s11 + $0x120] sm:$0xff] %v2223_v27  ;;  %v3006_v5 = vpop.f32.mrb[38].mxu1 }
 0x2a6   : > { %v2238_v33 = vadd.f32 %v3006_v5, %v4261_v20  ;;  %v2232_v51 = vpop.f32.mrb[39].mxu1 }
 0x2a7   : > { %v2233_v59 = vadd.f32 %v4261_v20, %v2232_v51 }
 0x2a8   : > { %2400 = vst [vmem:[%s4265_s11 + $0x138] sm:$0xff] %v2238_v33 }
 0x2a9   : > { %2399 = vst [vmem:[%s4265_s11 + $0x130] sm:$0xff] %v2233_v59  ;;  %v3009_v32 = vpop.f32.mrb[40].mxu1 }
 0x2aa   : > { %v2248_v28 = vadd.f32 %v3009_v32, %v4261_v20  ;;  %v2242_v47 = vpop.f32.mrb[41].mxu1 }
 0x2ab   : > { %v2243_v37 = vadd.f32 %v4261_v20, %v2242_v47 }
 0x2ac   : > { %2402 = vst [vmem:[%s4265_s11 + $0x148] sm:$0xff] %v2248_v28 }
 0x2ad   : > { %2401 = vst [vmem:[%s4265_s11 + $0x140] sm:$0xff] %v2243_v37  ;;  %v3012_v14 = vpop.f32.mrb[42].mxu1 }
 0x2ae   : > { %v2258_v43 = vadd.f32 %v3012_v14, %v4261_v20  ;;  %v2252_v50 = vpop.f32.mrb[43].mxu1 }
 0x2af   : > { %v2253_v52 = vadd.f32 %v4261_v20, %v2252_v50 }
 0x2b0   : > { %2404 = vst [vmem:[%s4265_s11 + $0x158] sm:$0xff] %v2258_v43 }
 0x2b1   : > { %2403 = vst [vmem:[%s4265_s11 + $0x150] sm:$0xff] %v2253_v52  ;;  %v3015_v31 = vpop.f32.mrb[44].mxu1 }
 0x2b2   : > { %v2268_v57 = vadd.f32 %v3015_v31, %v4261_v20  ;;  %v2262_v42 = vpop.f32.mrb[45].mxu1 }
 0x2b3   : > { %v2263_v40 = vadd.f32 %v4261_v20, %v2262_v42 }
 0x2b4   : > { %2406 = vst [vmem:[%s4265_s11 + $0x168] sm:$0xff] %v2268_v57 }
 0x2b5   : > { %2405 = vst [vmem:[%s4265_s11 + $0x160] sm:$0xff] %v2263_v40  ;;  %v3018_v25 = vpop.f32.mrb[46].mxu1 }
 0x2b6   : > { %v2278_v0 = vadd.f32 %v3018_v25, %v4261_v20  ;;  %v2272_v38 = vpop.f32.mrb[47].mxu1 }
 0x2b7   : > { %v2273_v8 = vadd.f32 %v4261_v20, %v2272_v38 }
 0x2b8   : > { %2408 = vst [vmem:[%s4265_s11 + $0x178] sm:$0xff] %v2278_v0 }
 0x2b9   : > { %2407 = vst [vmem:[%s4265_s11 + $0x170] sm:$0xff] %v2273_v8  ;;  %v3021_v17 = vpop.f32.mrb[48].mxu1 }
 0x2ba   : > { %v2288_v54 = vadd.f32 %v3021_v17, %v4261_v20  ;;  %v2282_v44 = vpop.f32.mrb[49].mxu1 }
 0x2bb   : > { %v2283_v15 = vadd.f32 %v4261_v20, %v2282_v44 }
 0x2bc   : > { %2410 = vst [vmem:[%s4265_s11 + $0x188] sm:$0xff] %v2288_v54 }
 0x2bd   : > { %2409 = vst [vmem:[%s4265_s11 + $0x180] sm:$0xff] %v2283_v15  ;;  %v3024_v61 = vpop.f32.mrb[50].mxu1 }
 0x2be   : > { %v2298_v1 = vadd.f32 %v3024_v61, %v4261_v20  ;;  %v2292_v45 = vpop.f32.mrb[51].mxu1 }
 0x2bf   : > { %v2293_v55 = vadd.f32 %v4261_v20, %v2292_v45 }
 0x2c0   : > { %2412 = vst [vmem:[%s4265_s11 + $0x198] sm:$0xff] %v2298_v1 }
 0x2c1   : > { %2411 = vst [vmem:[%s4265_s11 + $0x190] sm:$0xff] %v2293_v55  ;;  %v3027_v41 = vpop.f32.mrb[52].mxu1 }
 0x2c2   : > { %v2308_v53 = vadd.f32 %v3027_v41, %v4261_v20  ;;  %v2302_v62 = vpop.f32.mrb[53].mxu1 }
 0x2c3   : > { %v2303_v2 = vadd.f32 %v4261_v20, %v2302_v62 }
 0x2c4   : > { %2414 = vst [vmem:[%s4265_s11 + $0x1a8] sm:$0xff] %v2308_v53 }
 0x2c5   : > { %2413 = vst [vmem:[%s4265_s11 + $0x1a0] sm:$0xff] %v2303_v2  ;;  %v3030_v6 = vpop.f32.mrb[54].mxu1 }
 0x2c6   : > { %v2318_v22 = vadd.f32 %v3030_v6, %v4261_v20  ;;  %v2312_v39 = vpop.f32.mrb[55].mxu1 }
 0x2c7   : > { %v2313_v9 = vadd.f32 %v4261_v20, %v2312_v39 }
 0x2c8   : > { %2416 = vst [vmem:[%s4265_s11 + $0x1b8] sm:$0xff] %v2318_v22 }
 0x2c9   : > { %2415 = vst [vmem:[%s4265_s11 + $0x1b0] sm:$0xff] %v2313_v9  ;;  %v3033_v19 = vpop.f32.mrb[56].mxu1 }
 0x2ca   : > { %v2328_v18 = vadd.f32 %v3033_v19, %v4261_v20  ;;  %v2322_v13 = vpop.f32.mrb[57].mxu1 }
 0x2cb   : > { %v2323_v58 = vadd.f32 %v4261_v20, %v2322_v13 }
 0x2cc   : > { %2418 = vst [vmem:[%s4265_s11 + $0x1c8] sm:$0xff] %v2328_v18 }
 0x2cd   : > { %2417 = vst [vmem:[%s4265_s11 + $0x1c0] sm:$0xff] %v2323_v58  ;;  %v3036_v46 = vpop.f32.mrb[58].mxu1 }
 0x2ce   : > { %v2338_v21 = vadd.f32 %v3036_v46, %v4261_v20  ;;  %v2332_v7 = vpop.f32.mrb[59].mxu1 }
 0x2cf   : > { %v2333_v10 = vadd.f32 %v4261_v20, %v2332_v7 }
 0x2d0   : > { %2420 = vst [vmem:[%s4265_s11 + $0x1d8] sm:$0xff] %v2338_v21 }
 0x2d1   : > { %2419 = vst [vmem:[%s4265_s11 + $0x1d0] sm:$0xff] %v2333_v10  ;;  %v3039_v23 = vpop.f32.mrb[60].mxu1 }
 0x2d2   : > { %v2348_v60 = vadd.f32 %v3039_v23, %v4261_v20  ;;  %v2342_v36 = vpop.f32.mrb[61].mxu1 }
 0x2d3   : > { %v2343_v26 = vadd.f32 %v4261_v20, %v2342_v36 }
 0x2d4   : > { %2422 = vst [vmem:[%s4265_s11 + $0x1e8] sm:$0xff] %v2348_v60 }
 0x2d5   : > { %2421 = vst [vmem:[%s4265_s11 + $0x1e0] sm:$0xff] %v2343_v26  ;;  %v3042_v16 = vpop.f32.mrb[62].mxu1 }
 0x2d6   : > { %v2358_v12 = vadd.f32 %v3042_v16, %v4261_v20  ;;  %v2352_v24 = vpop.f32.mrb[63].mxu1 }
 0x2d7   : > { %v2353_v63 = vadd.f32 %v4261_v20, %v2352_v24 }
 0x2d8   : > { %2424 = vst [vmem:[%s4265_s11 + $0x1f8] sm:$0xff] %v2358_v12 }
 0x2d9   : > { %2423 = vst [vmem:[%s4265_s11 + $0x1f0] sm:$0xff] %v2353_v63 }
 0x2da   : > { %3490 = shalt.err (!%p3487_p3)
}
 0x2db   : > { %s3491_s30 = scalar_lea.hbm %s4395_s16, 8192  ;;  %s3495_s8 = scalar_lea.hbm %s4450_s5, 16384 }
 0x2dc   : > { %p3492_p4 = scmp.ne.s32.totalorder %s4395_s16, %s3491_s30  ;;  %p3496_p9 = scmp.lt.u32.totalorder %s4395_s16, %s4450_s5 }
 0x2dd   : > { %p3497_p10 = scmp.lt.u32.totalorder %s3495_s8, %s3491_s30  ;;  %p3499_p12 = scmp.lt.u32.totalorder %s3491_s30, %s4395_s16 }
 0x2de   : > { %p3493_p7 = pnand %p3492_p4, %p3613_p5 }
 0x2df   : > { %p3498_p11 = por %p3497_p10, %p3496_p9 }
 0x2e0   : > { %p3494_p8 = pneg %p3493_p7 }
 0x2e1   : > { %p3500_p13 = por %p3499_p12, %p3498_p11 }
 0x2e3   : > { %p3501_p0 = pnand %p3500_p13, %p3494_p8 }
 0x2e5   : > { %3504 = shalt.err (!%p3501_p0)
}
 0x2e6   : > { %s3543_s11 = smov 128   ;;  %s3544_s12 = smov 8  }
 0x2e7   : > { %3051 = dma.vmem_to_hbm [thread:$0]  (%p3613_p5), %s4397_s13, 8192, %s4395_s16, %s4404_s22, %s3543_s11, %s3543_s11, %s3544_s12  }
 0x2e8 PF: > { %p3057_p1 = scmp.ge.s32.totalorder %s3539_s21, 2  ;;  %s2454_s14 = sand.u32 1, %s3527_s18  }
 0x2e9   : > { %s2455_s15 = scalar_lea.sflag [#allocation3], %s2454_s14 }
 0x2ea   : > { %p3054_p2 = pnand %p3057_p1, %p3617_p6 }
 0x2ec   : > { %3522 = dma.done.wait (!%p3054_p2), %s2455_s15, 8192  }
 0x2ed   : > { %3524 = vsyncadd (!%p3054_p2), %s2455_s15, 4294959104  ;;  %p15_p3 = scmp.ge.s32.totalorder %s3600_s24, 4   ;;  %s4495_s18 = smov %s3531_s19 }
 0x2ee   : > { %s4496_s19 = smov %s3535_s20  ;;  %s4497_s20 = smov %s3611_s27 }
 0x2ef   : > { %s4498_s21 = smov %s3600_s24  ;;  %17 = sbr.rel (!%p15_p3) target bundleno = 3 (0x3), region = 75 }
 0x2f6   :  { %2460 = vsyncpa [#allocation3], 1 }
 0x2f7   :  { %2462 = vsyncpa [#allocation3 + $0x1], 1 }

</bundles_post_ra>
